<compile_context>
chip_gen: v7x
topology: tpu7x:2x2x1
jax: 0.10.0
libtpu: 0.0.40
codegen_flags: <defaults>
</compile_context>

<pallas_src>
import jax
import jax.numpy as jnp
from jax.experimental import pallas as pl
from jax.experimental.pallas import tpu as pltpu


def _bottleneck_kernel(x_ref, s1_ref, t1_ref, w1_ref, b1_ref,
                       s2_ref, t2_ref, w2_ref, b2_ref,
                       s3_ref, t3_ref, w3_ref, b3_ref,
                       o_ref, pad_ref):
    """One batch element per grid step; all tensors channels-last (NHWC)."""
    _, H, W, Cin = x_ref.shape
    P = w1_ref.shape[1]  # planes

    # ---- load input once, widen in-register --------------------------------
    x = x_ref[...].reshape(H * W, Cin).astype(jnp.float32)

    # ---- bn1 -> relu -> conv1 (1x1) -----------------------------------------
    a1 = jnp.maximum(x * s1_ref[...] + t1_ref[...], 0.0)
    y1 = jnp.dot(a1, w1_ref[...], preferred_element_type=jnp.float32) + b1_ref[...]

    # ---- bn2 -> relu --------------------------------------------------------
    a2 = jnp.maximum(y1 * s2_ref[...] + t2_ref[...], 0.0)          # (H*W, P)

    # ---- conv2 (3x3, stride=1, padding=1) -----------------------------------
    # Zero-pad spatially inside VMEM (no HBM pad round trip), then accumulate
    # the 9 shifted 1x1 matmuls on the MXU.
    pad_ref[...] = jnp.zeros_like(pad_ref)
    pad_ref[1:H + 1, 1:W + 1, :] = a2.reshape(H, W, P)
    acc = jnp.zeros((H * W, P), jnp.float32)
    for ky in range(3):
        for kx in range(3):
            patch = pad_ref[ky:ky + H, kx:kx + W, :].reshape(H * W, P)
            acc = acc + jnp.dot(patch, w2_ref[ky, kx],
                                preferred_element_type=jnp.float32)
    y2 = acc + b2_ref[...]

    # ---- bn3 -> relu -> conv3 (1x1) + residual ------------------------------
    a3 = jnp.maximum(y2 * s3_ref[...] + t3_ref[...], 0.0)
    y3 = jnp.dot(a3, w3_ref[...], preferred_element_type=jnp.float32) + b3_ref[...]
    out = y3 + x
    o_ref[...] = out.reshape(1, H, W, Cin).astype(o_ref.dtype)


def bottleneck2d(x_nchw, params, *, eps=1e-5):
    """Pallas forward pass of Bottleneck2D (stride=1, downsample=None)."""
    N, Cin, H, W = x_nchw.shape
    P = params["conv1_w"].shape[0]  # planes

    def bn_affine(p):
        gamma, beta, mean, var = p
        s = gamma / jnp.sqrt(var + eps)
        return (s.reshape(1, -1).astype(jnp.float32),
                (beta - mean * s).reshape(1, -1).astype(jnp.float32))

    s1, t1 = bn_affine(params["bn1"])
    s2, t2 = bn_affine(params["bn2"])
    s3, t3 = bn_affine(params["bn3"])

    # torch conv weights are (out, in, kh, kw) -> channels-last matmul form.
    w1 = jnp.transpose(params["conv1_w"][:, :, 0, 0], (1, 0))       # (Cin, P)
    w2 = jnp.transpose(params["conv2_w"], (2, 3, 1, 0))             # (3, 3, P, P)
    w3 = jnp.transpose(params["conv3_w"][:, :, 0, 0], (1, 0))       # (P, Cin)
    b1 = params["conv1_b"].reshape(1, -1)
    b2 = params["conv2_b"].reshape(1, -1)
    b3 = params["conv3_b"].reshape(1, -1)

    x_nhwc = jnp.transpose(x_nchw, (0, 2, 3, 1))                    # C on lanes

    bcast = lambda shape: pl.BlockSpec(shape, lambda n: (0, 0))
    out_nhwc = pl.pallas_call(
        _bottleneck_kernel,
        out_shape=jax.ShapeDtypeStruct((N, H, W, Cin), x_nchw.dtype),
        grid_spec=pltpu.PrefetchScalarGridSpec(
            num_scalar_prefetch=0,
            grid=(N,),
            in_specs=[
                pl.BlockSpec((1, H, W, Cin), lambda n: (n, 0, 0, 0)),   # x
                bcast((1, Cin)), bcast((1, Cin)),                       # s1, t1
                bcast((Cin, P)), bcast((1, P)),                         # w1, b1
                bcast((1, P)), bcast((1, P)),                           # s2, t2
                pl.BlockSpec((3, 3, P, P), lambda n: (0, 0, 0, 0)),     # w2
                bcast((1, P)),                                          # b2
                bcast((1, P)), bcast((1, P)),                           # s3, t3
                bcast((P, Cin)), bcast((1, Cin)),                       # w3, b3
            ],
            out_specs=pl.BlockSpec((1, H, W, Cin), lambda n: (n, 0, 0, 0)),
            scratch_shapes=[pltpu.VMEM((H + 2, W + 2, P), jnp.float32)],
        ),
        compiler_params=pltpu.CompilerParams(
            dimension_semantics=("parallel",)),
    )(x_nhwc, s1, t1, w1, b1, s2, t2, w2, b2, s3, t3, w3, b3)

    return jnp.transpose(out_nhwc, (0, 3, 1, 2))


def bottleneck2d_ref(x, params, eps=1e-5):
    """Plain-JAX reference mirroring the PyTorch module (eval-mode BN)."""
    def bn(v, p):
        gamma, beta, mean, var = p
        inv = gamma / jnp.sqrt(var + eps)
        return v * inv[None, :, None, None] + (beta - mean * inv)[None, :, None, None]

    def conv(v, w, b, padding=0):
        y = jax.lax.conv_general_dilated(
            v, w, window_strides=(1, 1),
            padding=[(padding, padding), (padding, padding)],
            dimension_numbers=("NCHW", "OIHW", "NCHW"))
        return y + b[None, :, None, None]

    out = jnp.maximum(bn(x, params["bn1"]), 0.0)
    out = conv(out, params["conv1_w"], params["conv1_b"])
    out = jnp.maximum(bn(out, params["bn2"]), 0.0)
    out = conv(out, params["conv2_w"], params["conv2_b"], padding=1)
    out = jnp.maximum(bn(out, params["bn3"]), 0.0)
    out = conv(out, params["conv3_w"], params["conv3_b"])
    return out + x


if __name__ == "__main__":
    key = jax.random.PRNGKey(0)
    N, Cin, H, W = 2, 4, 16, 16
    planes = Cin // 2  # Bottleneck2D.expansion == 2

    ks = list(jax.random.split(key, 10))

    def nrm(k, shape, scale=1.0):
        return scale * jax.random.normal(k, shape, dtype=jnp.float32)

    def bn_params(k, c):
        k1, k2, k3, k4 = jax.random.split(k, 4)
        return (jax.random.uniform(k1, (c,), minval=0.5, maxval=1.5),   # gamma
                nrm(k2, (c,), 0.1),                                     # beta
                nrm(k3, (c,), 0.1),                                     # running_mean
                jax.random.uniform(k4, (c,), minval=0.5, maxval=1.5))   # running_var

    params = {
        "bn1": bn_params(ks[0], Cin),
        "conv1_w": nrm(ks[1], (planes, Cin, 1, 1), 1.0 / (Cin ** 0.5)),
        "conv1_b": nrm(ks[2], (planes,), 0.1),
        "bn2": bn_params(ks[3], planes),
        "conv2_w": nrm(ks[4], (planes, planes, 3, 3), 1.0 / ((9 * planes) ** 0.5)),
        "conv2_b": nrm(ks[5], (planes,), 0.1),
        "bn3": bn_params(ks[6], planes),
        "conv3_w": nrm(ks[7], (Cin, planes, 1, 1), 1.0 / (planes ** 0.5)),
        "conv3_b": nrm(ks[8], (Cin,), 0.1),
    }
    x = nrm(ks[9], (N, Cin, H, W))

    out = jax.block_until_ready(jax.jit(bottleneck2d)(x, params))
    ref = bottleneck2d_ref(x, params)

    assert out.shape == x.shape and out.dtype == x.dtype
    err = float(jnp.max(jnp.abs(out - ref)))
    assert err < 1e-3, f"max abs err = {err}"
    print("KERNEL_OK")
</pallas_src>

<mosaic_0001>
module attributes {stable_mosaic.version = 11 : i64} {
  func.func @_bottleneck_kernel(%arg0: i32, %arg1: memref<1x16x16x4xf32, #tpu.memory_space<vmem>>, %arg2: memref<1x4xf32, #tpu.memory_space<vmem>>, %arg3: memref<1x4xf32, #tpu.memory_space<vmem>>, %arg4: memref<4x2xf32, #tpu.memory_space<vmem>>, %arg5: memref<1x2xf32, #tpu.memory_space<vmem>>, %arg6: memref<1x2xf32, #tpu.memory_space<vmem>>, %arg7: memref<1x2xf32, #tpu.memory_space<vmem>>, %arg8: memref<3x3x2x2xf32, #tpu.memory_space<vmem>>, %arg9: memref<1x2xf32, #tpu.memory_space<vmem>>, %arg10: memref<1x2xf32, #tpu.memory_space<vmem>>, %arg11: memref<1x2xf32, #tpu.memory_space<vmem>>, %arg12: memref<2x4xf32, #tpu.memory_space<vmem>>, %arg13: memref<1x4xf32, #tpu.memory_space<vmem>>, %arg14: memref<1x16x16x4xf32, #tpu.memory_space<vmem>>, %arg15: memref<18x18x2xf32, #tpu.memory_space<vmem>>) attributes {dimension_semantics = [#tpu.dimension_semantics<parallel>], iteration_bounds = array<i64: 2>, scalar_prefetch = 0 : i64, scratch_operands = 1 : i64, tpu.core_type = #tpu.core_type<tc>, window_params = [{transform_indices = @transform_0, window_bounds = array<i64: 1, 16, 16, 4>}, {pipeline_mode = #tpu.pipeline_mode<synchronous>, transform_indices = @transform_1, window_bounds = array<i64: 1, 4>}, {pipeline_mode = #tpu.pipeline_mode<synchronous>, transform_indices = @transform_2, window_bounds = array<i64: 1, 4>}, {pipeline_mode = #tpu.pipeline_mode<synchronous>, transform_indices = @transform_3, window_bounds = array<i64: 4, 2>}, {pipeline_mode = #tpu.pipeline_mode<synchronous>, transform_indices = @transform_4, window_bounds = array<i64: 1, 2>}, {pipeline_mode = #tpu.pipeline_mode<synchronous>, transform_indices = @transform_5, window_bounds = array<i64: 1, 2>}, {pipeline_mode = #tpu.pipeline_mode<synchronous>, transform_indices = @transform_6, window_bounds = array<i64: 1, 2>}, {pipeline_mode = #tpu.pipeline_mode<synchronous>, transform_indices = @transform_7, window_bounds = array<i64: 3, 3, 2, 2>}, {pipeline_mode = #tpu.pipeline_mode<synchronous>, transform_indices = @transform_8, window_bounds = array<i64: 1, 2>}, {pipeline_mode = #tpu.pipeline_mode<synchronous>, transform_indices = @transform_9, window_bounds = array<i64: 1, 2>}, {pipeline_mode = #tpu.pipeline_mode<synchronous>, transform_indices = @transform_10, window_bounds = array<i64: 1, 2>}, {pipeline_mode = #tpu.pipeline_mode<synchronous>, transform_indices = @transform_11, window_bounds = array<i64: 2, 4>}, {pipeline_mode = #tpu.pipeline_mode<synchronous>, transform_indices = @transform_12, window_bounds = array<i64: 1, 4>}, {transform_indices = @transform_13, window_bounds = array<i64: 1, 16, 16, 4>}]} {
    %c0 = arith.constant 0 : index
    %c0_0 = arith.constant 0 : index
    %c0_1 = arith.constant 0 : index
    %c0_2 = arith.constant 0 : index
    %0 = vector.load %arg1[%c0, %c0_0, %c0_1, %c0_2] : memref<1x16x16x4xf32, #tpu.memory_space<vmem>>, vector<1x16x16x4xf32>
    %1 = vector.shape_cast %0 : vector<1x16x16x4xf32> to vector<256x4xf32>
    %c0_3 = arith.constant 0 : index
    %c0_4 = arith.constant 0 : index
    %2 = vector.load %arg2[%c0_3, %c0_4] : memref<1x4xf32, #tpu.memory_space<vmem>>, vector<1x4xf32>
    %3 = vector.broadcast %2 : vector<1x4xf32> to vector<256x4xf32>
    %4 = arith.mulf %1, %3 : vector<256x4xf32>
    %c0_5 = arith.constant 0 : index
    %c0_6 = arith.constant 0 : index
    %5 = vector.load %arg3[%c0_5, %c0_6] : memref<1x4xf32, #tpu.memory_space<vmem>>, vector<1x4xf32>
    %6 = vector.broadcast %5 : vector<1x4xf32> to vector<256x4xf32>
    %7 = arith.addf %4, %6 : vector<256x4xf32>
    %cst = arith.constant 0.000000e+00 : f32
    %8 = vector.broadcast %cst : f32 to vector<256x4xf32>
    %9 = arith.maximumf %7, %8 : vector<256x4xf32>
    %c0_7 = arith.constant 0 : index
    %c0_8 = arith.constant 0 : index
    %10 = vector.load %arg4[%c0_7, %c0_8] : memref<4x2xf32, #tpu.memory_space<vmem>>, vector<4x2xf32>
    %cst_9 = arith.constant dense<0.000000e+00> : vector<256x2xf32>
    %11 = tpu.matmul %9, %10, %cst_9 {dimension_numbers = #tpu.dot_dimension_numbers<[1], [0], [0], [1], [0, 0, 1, 1], [], []>} : vector<256x4xf32>, vector<4x2xf32>, vector<256x2xf32> -> vector<256x2xf32>
    %c0_10 = arith.constant 0 : index
    %c0_11 = arith.constant 0 : index
    %12 = vector.load %arg5[%c0_10, %c0_11] : memref<1x2xf32, #tpu.memory_space<vmem>>, vector<1x2xf32>
    %13 = vector.broadcast %12 : vector<1x2xf32> to vector<256x2xf32>
    %14 = arith.addf %11, %13 : vector<256x2xf32>
    %c0_12 = arith.constant 0 : index
    %c0_13 = arith.constant 0 : index
    %15 = vector.load %arg6[%c0_12, %c0_13] : memref<1x2xf32, #tpu.memory_space<vmem>>, vector<1x2xf32>
    %16 = vector.broadcast %15 : vector<1x2xf32> to vector<256x2xf32>
    %17 = arith.mulf %14, %16 : vector<256x2xf32>
    %c0_14 = arith.constant 0 : index
    %c0_15 = arith.constant 0 : index
    %18 = vector.load %arg7[%c0_14, %c0_15] : memref<1x2xf32, #tpu.memory_space<vmem>>, vector<1x2xf32>
    %19 = vector.broadcast %18 : vector<1x2xf32> to vector<256x2xf32>
    %20 = arith.addf %17, %19 : vector<256x2xf32>
    %cst_16 = arith.constant 0.000000e+00 : f32
    %21 = vector.broadcast %cst_16 : f32 to vector<256x2xf32>
    %22 = arith.maximumf %20, %21 : vector<256x2xf32>
    %cst_17 = arith.constant 0.000000e+00 : f32
    %23 = vector.broadcast %cst_17 : f32 to vector<18x18x2xf32>
    %c0_18 = arith.constant 0 : index
    %c0_19 = arith.constant 0 : index
    %c0_20 = arith.constant 0 : index
    %24 = vector.load %arg15[%c0_18, %c0_19, %c0_20] : memref<18x18x2xf32, #tpu.memory_space<vmem>>, vector<18x18x2xf32>
    tpu.vector_store %arg15[%c0_18, %c0_19, %c0_20], %23 {strides = array<i32>} : memref<18x18x2xf32, #tpu.memory_space<vmem>>, vector<18x18x2xf32>,
    %25 = vector.shape_cast %22 : vector<256x2xf32> to vector<16x16x2xf32>
    %c1 = arith.constant 1 : index
    %c1_21 = arith.constant 1 : index
    %c0_22 = arith.constant 0 : index
    %26 = vector.load %arg15[%c1, %c1_21, %c0_22] : memref<18x18x2xf32, #tpu.memory_space<vmem>>, vector<16x16x2xf32>
    tpu.vector_store %arg15[%c1, %c1_21, %c0_22], %25 {strides = array<i32>} : memref<18x18x2xf32, #tpu.memory_space<vmem>>, vector<16x16x2xf32>,
    %cst_23 = arith.constant 0.000000e+00 : f32
    %27 = vector.broadcast %cst_23 : f32 to vector<256x2xf32>
    %c0_24 = arith.constant 0 : index
    %c0_25 = arith.constant 0 : index
    %c0_26 = arith.constant 0 : index
    %28 = vector.load %arg15[%c0_24, %c0_25, %c0_26] : memref<18x18x2xf32, #tpu.memory_space<vmem>>, vector<16x16x2xf32>
    %29 = vector.shape_cast %28 : vector<16x16x2xf32> to vector<256x2xf32>
    %c0_27 = arith.constant 0 : index
    %c0_28 = arith.constant 0 : index
    %c0_29 = arith.constant 0 : index
    %c0_30 = arith.constant 0 : index
    %30 = vector.load %arg8[%c0_27, %c0_28, %c0_29, %c0_30] : memref<3x3x2x2xf32, #tpu.memory_space<vmem>>, vector<1x1x2x2xf32>
    %31 = vector.shape_cast %30 : vector<1x1x2x2xf32> to vector<2x2xf32>
    %cst_31 = arith.constant dense<0.000000e+00> : vector<256x2xf32>
    %32 = tpu.matmul %29, %31, %cst_31 {dimension_numbers = #tpu.dot_dimension_numbers<[1], [0], [0], [1], [0, 0, 1, 1], [], []>} : vector<256x2xf32>, vector<2x2xf32>, vector<256x2xf32> -> vector<256x2xf32>
    %33 = arith.addf %27, %32 : vector<256x2xf32>
    %c0_32 = arith.constant 0 : index
    %c1_33 = arith.constant 1 : index
    %c0_34 = arith.constant 0 : index
    %34 = vector.load %arg15[%c0_32, %c1_33, %c0_34] : memref<18x18x2xf32, #tpu.memory_space<vmem>>, vector<16x16x2xf32>
    %35 = vector.shape_cast %34 : vector<16x16x2xf32> to vector<256x2xf32>
    %c0_35 = arith.constant 0 : index
    %c1_36 = arith.constant 1 : index
    %c0_37 = arith.constant 0 : index
    %c0_38 = arith.constant 0 : index
    %36 = vector.load %arg8[%c0_35, %c1_36, %c0_37, %c0_38] : memref<3x3x2x2xf32, #tpu.memory_space<vmem>>, vector<1x1x2x2xf32>
    %37 = vector.shape_cast %36 : vector<1x1x2x2xf32> to vector<2x2xf32>
    %cst_39 = arith.constant dense<0.000000e+00> : vector<256x2xf32>
    %38 = tpu.matmul %35, %37, %cst_39 {dimension_numbers = #tpu.dot_dimension_numbers<[1], [0], [0], [1], [0, 0, 1, 1], [], []>} : vector<256x2xf32>, vector<2x2xf32>, vector<256x2xf32> -> vector<256x2xf32>
    %39 = arith.addf %33, %38 : vector<256x2xf32>
    %c0_40 = arith.constant 0 : index
    %c2 = arith.constant 2 : index
    %c0_41 = arith.constant 0 : index
    %40 = vector.load %arg15[%c0_40, %c2, %c0_41] : memref<18x18x2xf32, #tpu.memory_space<vmem>>, vector<16x16x2xf32>
    %41 = vector.shape_cast %40 : vector<16x16x2xf32> to vector<256x2xf32>
    %c0_42 = arith.constant 0 : index
    %c2_43 = arith.constant 2 : index
    %c0_44 = arith.constant 0 : index
    %c0_45 = arith.constant 0 : index
    %42 = vector.load %arg8[%c0_42, %c2_43, %c0_44, %c0_45] : memref<3x3x2x2xf32, #tpu.memory_space<vmem>>, vector<1x1x2x2xf32>
    %43 = vector.shape_cast %42 : vector<1x1x2x2xf32> to vector<2x2xf32>
    %cst_46 = arith.constant dense<0.000000e+00> : vector<256x2xf32>
    %44 = tpu.matmul %41, %43, %cst_46 {dimension_numbers = #tpu.dot_dimension_numbers<[1], [0], [0], [1], [0, 0, 1, 1], [], []>} : vector<256x2xf32>, vector<2x2xf32>, vector<256x2xf32> -> vector<256x2xf32>
    %45 = arith.addf %39, %44 : vector<256x2xf32>
    %c1_47 = arith.constant 1 : index
    %c0_48 = arith.constant 0 : index
    %c0_49 = arith.constant 0 : index
    %46 = vector.load %arg15[%c1_47, %c0_48, %c0_49] : memref<18x18x2xf32, #tpu.memory_space<vmem>>, vector<16x16x2xf32>
    %47 = vector.shape_cast %46 : vector<16x16x2xf32> to vector<256x2xf32>
    %c1_50 = arith.constant 1 : index
    %c0_51 = arith.constant 0 : index
    %c0_52 = arith.constant 0 : index
    %c0_53 = arith.constant 0 : index
    %48 = vector.load %arg8[%c1_50, %c0_51, %c0_52, %c0_53] : memref<3x3x2x2xf32, #tpu.memory_space<vmem>>, vector<1x1x2x2xf32>
    %49 = vector.shape_cast %48 : vector<1x1x2x2xf32> to vector<2x2xf32>
    %cst_54 = arith.constant dense<0.000000e+00> : vector<256x2xf32>
    %50 = tpu.matmul %47, %49, %cst_54 {dimension_numbers = #tpu.dot_dimension_numbers<[1], [0], [0], [1], [0, 0, 1, 1], [], []>} : vector<256x2xf32>, vector<2x2xf32>, vector<256x2xf32> -> vector<256x2xf32>
    %51 = arith.addf %45, %50 : vector<256x2xf32>
    %c1_55 = arith.constant 1 : index
    %c1_56 = arith.constant 1 : index
    %c0_57 = arith.constant 0 : index
    %52 = vector.load %arg15[%c1_55, %c1_56, %c0_57] : memref<18x18x2xf32, #tpu.memory_space<vmem>>, vector<16x16x2xf32>
    %53 = vector.shape_cast %52 : vector<16x16x2xf32> to vector<256x2xf32>
    %c1_58 = arith.constant 1 : index
    %c1_59 = arith.constant 1 : index
    %c0_60 = arith.constant 0 : index
    %c0_61 = arith.constant 0 : index
    %54 = vector.load %arg8[%c1_58, %c1_59, %c0_60, %c0_61] : memref<3x3x2x2xf32, #tpu.memory_space<vmem>>, vector<1x1x2x2xf32>
    %55 = vector.shape_cast %54 : vector<1x1x2x2xf32> to vector<2x2xf32>
    %cst_62 = arith.constant dense<0.000000e+00> : vector<256x2xf32>
    %56 = tpu.matmul %53, %55, %cst_62 {dimension_numbers = #tpu.dot_dimension_numbers<[1], [0], [0], [1], [0, 0, 1, 1], [], []>} : vector<256x2xf32>, vector<2x2xf32>, vector<256x2xf32> -> vector<256x2xf32>
    %57 = arith.addf %51, %56 : vector<256x2xf32>
    %c1_63 = arith.constant 1 : index
    %c2_64 = arith.constant 2 : index
    %c0_65 = arith.constant 0 : index
    %58 = vector.load %arg15[%c1_63, %c2_64, %c0_65] : memref<18x18x2xf32, #tpu.memory_space<vmem>>, vector<16x16x2xf32>
    %59 = vector.shape_cast %58 : vector<16x16x2xf32> to vector<256x2xf32>
    %c1_66 = arith.constant 1 : index
    %c2_67 = arith.constant 2 : index
    %c0_68 = arith.constant 0 : index
    %c0_69 = arith.constant 0 : index
    %60 = vector.load %arg8[%c1_66, %c2_67, %c0_68, %c0_69] : memref<3x3x2x2xf32, #tpu.memory_space<vmem>>, vector<1x1x2x2xf32>
    %61 = vector.shape_cast %60 : vector<1x1x2x2xf32> to vector<2x2xf32>
    %cst_70 = arith.constant dense<0.000000e+00> : vector<256x2xf32>
    %62 = tpu.matmul %59, %61, %cst_70 {dimension_numbers = #tpu.dot_dimension_numbers<[1], [0], [0], [1], [0, 0, 1, 1], [], []>} : vector<256x2xf32>, vector<2x2xf32>, vector<256x2xf32> -> vector<256x2xf32>
    %63 = arith.addf %57, %62 : vector<256x2xf32>
    %c2_71 = arith.constant 2 : index
    %c0_72 = arith.constant 0 : index
    %c0_73 = arith.constant 0 : index
    %64 = vector.load %arg15[%c2_71, %c0_72, %c0_73] : memref<18x18x2xf32, #tpu.memory_space<vmem>>, vector<16x16x2xf32>
    %65 = vector.shape_cast %64 : vector<16x16x2xf32> to vector<256x2xf32>
    %c2_74 = arith.constant 2 : index
    %c0_75 = arith.constant 0 : index
    %c0_76 = arith.constant 0 : index
    %c0_77 = arith.constant 0 : index
    %66 = vector.load %arg8[%c2_74, %c0_75, %c0_76, %c0_77] : memref<3x3x2x2xf32, #tpu.memory_space<vmem>>, vector<1x1x2x2xf32>
    %67 = vector.shape_cast %66 : vector<1x1x2x2xf32> to vector<2x2xf32>
    %cst_78 = arith.constant dense<0.000000e+00> : vector<256x2xf32>
    %68 = tpu.matmul %65, %67, %cst_78 {dimension_numbers = #tpu.dot_dimension_numbers<[1], [0], [0], [1], [0, 0, 1, 1], [], []>} : vector<256x2xf32>, vector<2x2xf32>, vector<256x2xf32> -> vector<256x2xf32>
    %69 = arith.addf %63, %68 : vector<256x2xf32>
    %c2_79 = arith.constant 2 : index
    %c1_80 = arith.constant 1 : index
    %c0_81 = arith.constant 0 : index
    %70 = vector.load %arg15[%c2_79, %c1_80, %c0_81] : memref<18x18x2xf32, #tpu.memory_space<vmem>>, vector<16x16x2xf32>
    %71 = vector.shape_cast %70 : vector<16x16x2xf32> to vector<256x2xf32>
    %c2_82 = arith.constant 2 : index
    %c1_83 = arith.constant 1 : index
    %c0_84 = arith.constant 0 : index
    %c0_85 = arith.constant 0 : index
    %72 = vector.load %arg8[%c2_82, %c1_83, %c0_84, %c0_85] : memref<3x3x2x2xf32, #tpu.memory_space<vmem>>, vector<1x1x2x2xf32>
    %73 = vector.shape_cast %72 : vector<1x1x2x2xf32> to vector<2x2xf32>
    %cst_86 = arith.constant dense<0.000000e+00> : vector<256x2xf32>
    %74 = tpu.matmul %71, %73, %cst_86 {dimension_numbers = #tpu.dot_dimension_numbers<[1], [0], [0], [1], [0, 0, 1, 1], [], []>} : vector<256x2xf32>, vector<2x2xf32>, vector<256x2xf32> -> vector<256x2xf32>
    %75 = arith.addf %69, %74 : vector<256x2xf32>
    %c2_87 = arith.constant 2 : index
    %c2_88 = arith.constant 2 : index
    %c0_89 = arith.constant 0 : index
    %76 = vector.load %arg15[%c2_87, %c2_88, %c0_89] : memref<18x18x2xf32, #tpu.memory_space<vmem>>, vector<16x16x2xf32>
    %77 = vector.shape_cast %76 : vector<16x16x2xf32> to vector<256x2xf32>
    %c2_90 = arith.constant 2 : index
    %c2_91 = arith.constant 2 : index
    %c0_92 = arith.constant 0 : index
    %c0_93 = arith.constant 0 : index
    %78 = vector.load %arg8[%c2_90, %c2_91, %c0_92, %c0_93] : memref<3x3x2x2xf32, #tpu.memory_space<vmem>>, vector<1x1x2x2xf32>
    %79 = vector.shape_cast %78 : vector<1x1x2x2xf32> to vector<2x2xf32>
    %cst_94 = arith.constant dense<0.000000e+00> : vector<256x2xf32>
    %80 = tpu.matmul %77, %79, %cst_94 {dimension_numbers = #tpu.dot_dimension_numbers<[1], [0], [0], [1], [0, 0, 1, 1], [], []>} : vector<256x2xf32>, vector<2x2xf32>, vector<256x2xf32> -> vector<256x2xf32>
    %81 = arith.addf %75, %80 : vector<256x2xf32>
    %c0_95 = arith.constant 0 : index
    %c0_96 = arith.constant 0 : index
    %82 = vector.load %arg9[%c0_95, %c0_96] : memref<1x2xf32, #tpu.memory_space<vmem>>, vector<1x2xf32>
    %83 = vector.broadcast %82 : vector<1x2xf32> to vector<256x2xf32>
    %84 = arith.addf %81, %83 : vector<256x2xf32>
    %c0_97 = arith.constant 0 : index
    %c0_98 = arith.constant 0 : index
    %85 = vector.load %arg10[%c0_97, %c0_98] : memref<1x2xf32, #tpu.memory_space<vmem>>, vector<1x2xf32>
    %86 = vector.broadcast %85 : vector<1x2xf32> to vector<256x2xf32>
    %87 = arith.mulf %84, %86 : vector<256x2xf32>
    %c0_99 = arith.constant 0 : index
    %c0_100 = arith.constant 0 : index
    %88 = vector.load %arg11[%c0_99, %c0_100] : memref<1x2xf32, #tpu.memory_space<vmem>>, vector<1x2xf32>
    %89 = vector.broadcast %88 : vector<1x2xf32> to vector<256x2xf32>
    %90 = arith.addf %87, %89 : vector<256x2xf32>
    %cst_101 = arith.constant 0.000000e+00 : f32
    %91 = vector.broadcast %cst_101 : f32 to vector<256x2xf32>
    %92 = arith.maximumf %90, %91 : vector<256x2xf32>
    %c0_102 = arith.constant 0 : index
    %c0_103 = arith.constant 0 : index
    %93 = vector.load %arg12[%c0_102, %c0_103] : memref<2x4xf32, #tpu.memory_space<vmem>>, vector<2x4xf32>
    %cst_104 = arith.constant dense<0.000000e+00> : vector<256x4xf32>
    %94 = tpu.matmul %92, %93, %cst_104 {dimension_numbers = #tpu.dot_dimension_numbers<[1], [0], [0], [1], [0, 0, 1, 1], [], []>} : vector<256x2xf32>, vector<2x4xf32>, vector<256x4xf32> -> vector<256x4xf32>
    %c0_105 = arith.constant 0 : index
    %c0_106 = arith.constant 0 : index
    %95 = vector.load %arg13[%c0_105, %c0_106] : memref<1x4xf32, #tpu.memory_space<vmem>>, vector<1x4xf32>
    %96 = vector.broadcast %95 : vector<1x4xf32> to vector<256x4xf32>
    %97 = arith.addf %94, %96 : vector<256x4xf32>
    %98 = arith.addf %97, %1 : vector<256x4xf32>
    %99 = vector.shape_cast %98 : vector<256x4xf32> to vector<1x16x16x4xf32>
    %c0_107 = arith.constant 0 : index
    %c0_108 = arith.constant 0 : index
    %c0_109 = arith.constant 0 : index
    %c0_110 = arith.constant 0 : index
    %100 = vector.load %arg14[%c0_107, %c0_108, %c0_109, %c0_110] : memref<1x16x16x4xf32, #tpu.memory_space<vmem>>, vector<1x16x16x4xf32>
    tpu.vector_store %arg14[%c0_107, %c0_108, %c0_109, %c0_110], %99 {strides = array<i32>} : memref<1x16x16x4xf32, #tpu.memory_space<vmem>>, vector<1x16x16x4xf32>,
    return
  }
  func.func @transform_0(%arg0: i32) -> (i32, i32, i32, i32) {
    %c0_i32 = arith.constant 0 : i32
    %c0_i32_0 = arith.constant 0 : i32
    %c0_i32_1 = arith.constant 0 : i32
    %c0_i32_2 = arith.constant 0 : i32
    return %arg0, %c0_i32, %c0_i32_0, %c0_i32_1 : i32, i32, i32, i32
  }
  func.func @transform_1(%arg0: i32) -> (i32, i32) {
    %c0_i32 = arith.constant 0 : i32
    %c0_i32_0 = arith.constant 0 : i32
    %c0_i32_1 = arith.constant 0 : i32
    return %c0_i32, %c0_i32_0 : i32, i32
  }
  func.func @transform_2(%arg0: i32) -> (i32, i32) {
    %c0_i32 = arith.constant 0 : i32
    %c0_i32_0 = arith.constant 0 : i32
    %c0_i32_1 = arith.constant 0 : i32
    return %c0_i32, %c0_i32_0 : i32, i32
  }
  func.func @transform_3(%arg0: i32) -> (i32, i32) {
    %c0_i32 = arith.constant 0 : i32
    %c0_i32_0 = arith.constant 0 : i32
    %c0_i32_1 = arith.constant 0 : i32
    return %c0_i32, %c0_i32_0 : i32, i32
  }
  func.func @transform_4(%arg0: i32) -> (i32, i32) {
    %c0_i32 = arith.constant 0 : i32
    %c0_i32_0 = arith.constant 0 : i32
    %c0_i32_1 = arith.constant 0 : i32
    return %c0_i32, %c0_i32_0 : i32, i32
  }
  func.func @transform_5(%arg0: i32) -> (i32, i32) {
    %c0_i32 = arith.constant 0 : i32
    %c0_i32_0 = arith.constant 0 : i32
    %c0_i32_1 = arith.constant 0 : i32
    return %c0_i32, %c0_i32_0 : i32, i32
  }
  func.func @transform_6(%arg0: i32) -> (i32, i32) {
    %c0_i32 = arith.constant 0 : i32
    %c0_i32_0 = arith.constant 0 : i32
    %c0_i32_1 = arith.constant 0 : i32
    return %c0_i32, %c0_i32_0 : i32, i32
  }
  func.func @transform_7(%arg0: i32) -> (i32, i32, i32, i32) {
    %c0_i32 = arith.constant 0 : i32
    %c0_i32_0 = arith.constant 0 : i32
    %c0_i32_1 = arith.constant 0 : i32
    %c0_i32_2 = arith.constant 0 : i32
    %c0_i32_3 = arith.constant 0 : i32
    return %c0_i32, %c0_i32_0, %c0_i32_1, %c0_i32_2 : i32, i32, i32, i32
  }
  func.func @transform_8(%arg0: i32) -> (i32, i32) {
    %c0_i32 = arith.constant 0 : i32
    %c0_i32_0 = arith.constant 0 : i32
    %c0_i32_1 = arith.constant 0 : i32
    return %c0_i32, %c0_i32_0 : i32, i32
  }
  func.func @transform_9(%arg0: i32) -> (i32, i32) {
    %c0_i32 = arith.constant 0 : i32
    %c0_i32_0 = arith.constant 0 : i32
    %c0_i32_1 = arith.constant 0 : i32
    return %c0_i32, %c0_i32_0 : i32, i32
  }
  func.func @transform_10(%arg0: i32) -> (i32, i32) {
    %c0_i32 = arith.constant 0 : i32
    %c0_i32_0 = arith.constant 0 : i32
    %c0_i32_1 = arith.constant 0 : i32
    return %c0_i32, %c0_i32_0 : i32, i32
  }
  func.func @transform_11(%arg0: i32) -> (i32, i32) {
    %c0_i32 = arith.constant 0 : i32
    %c0_i32_0 = arith.constant 0 : i32
    %c0_i32_1 = arith.constant 0 : i32
    return %c0_i32, %c0_i32_0 : i32, i32
  }
  func.func @transform_12(%arg0: i32) -> (i32, i32) {
    %c0_i32 = arith.constant 0 : i32
    %c0_i32_0 = arith.constant 0 : i32
    %c0_i32_1 = arith.constant 0 : i32
    return %c0_i32, %c0_i32_0 : i32, i32
  }
  func.func @transform_13(%arg0: i32) -> (i32, i32, i32, i32) {
    %c0_i32 = arith.constant 0 : i32
    %c0_i32_0 = arith.constant 0 : i32
    %c0_i32_1 = arith.constant 0 : i32
    %c0_i32_2 = arith.constant 0 : i32
    return %arg0, %c0_i32, %c0_i32_0, %c0_i32_1 : i32, i32, i32, i32
  }
}

</mosaic_0001>

<bundles_post_ra>
// kernel: bottleneck2d.1
= control target key start
LH: loop header
LB: loop body
LE: loop exit
PB: predicated region body
PF: predicated region fallthrough
CT: control target
= control target key end

     0   :  { %s6847_s25 = smov 0   ;;  %s8367_s0 = inlined_call_operand.vmem [shape: f32[2,16,16,4], index: 0, kind: input, shape index: {}]   ;;  %s8368_s1 = inlined_call_operand.vmem [shape: f32[1,4], index: 1, kind: input, shape index: {}]   ;;  %s8369_s2 = inlined_call_operand.vmem [shape: f32[1,4], index: 2, kind: input, shape index: {}]   ;;  %s8370_s3 = inlined_call_operand.vmem [shape: f32[4,2], index: 3, kind: input, shape index: {}]   ;;  %s8371_s4 = inlined_call_operand.vmem [shape: f32[1,2], index: 4, kind: input, shape index: {}]   ;;  %s8372_s5 = inlined_call_operand.vmem [shape: f32[1,2], index: 5, kind: input, shape index: {}]   ;;  %s8373_s6 = inlined_call_operand.vmem [shape: f32[1,2], index: 6, kind: input, shape index: {}]   ;;  %s8374_s7 = inlined_call_operand.vmem [shape: f32[3,3,2,2], index: 7, kind: input, shape index: {}]   ;;  %s8375_s8 = inlined_call_operand.vmem [shape: f32[1,2], index: 8, kind: input, shape index: {}]   ;;  %s8376_s9 = inlined_call_operand.vmem [shape: f32[1,2], index: 9, kind: input, shape index: {}]   ;;  %s8377_s10 = inlined_call_operand.vmem [shape: f32[1,2], index: 10, kind: input, shape index: {}]   ;;  %s8378_s11 = inlined_call_operand.vmem [shape: f32[2,4], index: 11, kind: input, shape index: {}]   ;;  %s8379_s12 = inlined_call_operand.vmem [shape: f32[1,4], index: 12, kind: input, shape index: {}]   ;;  %s8380_s13 = inlined_call_operand.vmem [shape: f32[2,16,16,4], index: 13, kind: output, shape index: {}]  }
   0x1 LB: > { %s5163_s26 = sadd.s32 4294967295, %s6774_s25   ;;  %p5167_p0 = scmp.ge.s32.totalorder %s6774_s25, 1  ;;  %s6774_s25 = sphi %s6847_s25, %s23_s25  }
   0x2   : > { %p387_p1 = scmp.lt.s32.totalorder %s6774_s25, 3 }
   0x4   : > { %p388_p2 = pnand %p5167_p0, %p387_p1 }
   0x6   : > { %391 = sbr.rel (%p388_p2) target bundleno = 1079 (0x437), region = 72 }
   0xd   : > { %v583_v0 = vld [vmem:[%s8370_s3] sm:$0xf]  ;;  %vm688_vm0 = vcmask 1043456   ;;  %p431_p3 = scmp.lt.s32.totalorder %s5163_s26, 1  ;;  %vm591_vm1 = vcmask 31744   ;;  %vm1027_vm2 = vcmask 15360  }
   0xe   : > { %5919 = vmatprep.subr.msk.mxu0 %vm688_vm0, %v583_v0  ;;  %v6864_v1 = vld [vmem:[%s8368_s1] ss:$0 sm:$0xff]  ;;  %vm1030_vm3 = vcmask 9216   ;;  %vm1279_vm4 = vcmask 1041408  }
   0xf   : > { %5920 = vmatpush3.msk.msra.mxu0 %vm688_vm0, %v583_v0  ;;  %s8427_s26 = smov (!%p431_p3, %s5163_s26), 1  ;;  %v6876_v2 = vld [vmem:[%s8369_s2] ss:$0 sm:$0xff] }
  0x10   : > { %s5554_s29 = sshll.u32 %s8427_s26, 8 }
  0x11   : > { %s6871_s17 = scalar_lea.vmem %s8367_s0, %s5554_s29  ;;  %s8235_s16 = scalar_lea.vmem %s8380_s13, %s5554_s29 }
  0x12   : > { %v441_v3 = vld [vmem:[%s6871_s17] sm:$0xff]  ;;  %v442_v4 = vld [vmem:[%s6871_s17 + $0x8] sm:$0xff]  ;;  %v443_v5 = vld [vmem:[%s6871_s17 + $0x10] sm:$0xff] }
  0x13   : > { %v480_v6 = vmul.f32 %v6864_v1, %v441_v3  ;;  %v481_v7 = vmul.f32 %v6864_v1, %v442_v4  ;;  %v482_v8 = vmul.f32 %v6864_v1, %v443_v5  ;;  %v444_v9 = vld [vmem:[%s6871_s17 + $0x18] sm:$0xff]  ;;  %v445_v10 = vld [vmem:[%s6871_s17 + $0x20] sm:$0xff]  ;;  %v446_v11 = vld [vmem:[%s6871_s17 + $0x28] sm:$0xff] }
  0x14   : > { %v483_v12 = vmul.f32 %v6864_v1, %v444_v9  ;;  %v484_v13 = vmul.f32 %v6864_v1, %v445_v10  ;;  %v447_v14 = vld [vmem:[%s6871_s17 + $0x30] sm:$0xff]  ;;  %v485_v19 = vmul.f32 %v6864_v1, %v446_v11  ;;  %v448_v25 = vld [vmem:[%s6871_s17 + $0x38] sm:$0xff]  ;;  %v449_v26 = vld [vmem:[%s6871_s17 + $0x40] sm:$0xff] }
  0x15   : > { %v519_v15 = vadd.f32 %v6876_v2, %v480_v6  ;;  %v520_v16 = vadd.f32 %v6876_v2, %v481_v7  ;;  %v521_v17 = vadd.f32 %v6876_v2, %v482_v8  ;;  %v486_v20 = vmul.f32 %v6864_v1, %v447_v14  ;;  %v450_v33 = vld [vmem:[%s6871_s17 + $0x48] sm:$0xff]  ;;  %v451_v34 = vld [vmem:[%s6871_s17 + $0x50] sm:$0xff]  ;;  %v452_v41 = vld [vmem:[%s6871_s17 + $0x58] sm:$0xff] }
  0x16   : > { %v522_v18 = vadd.f32 %v6876_v2, %v483_v12  ;;  %v523_v24 = vadd.f32 %v6876_v2, %v484_v13  ;;  %v524_v28 = vadd.f32 %v6876_v2, %v485_v19  ;;  %v487_v29 = vmul.f32 %v6864_v1, %v448_v25  ;;  %v453_v42 = vld [vmem:[%s6871_s17 + $0x60] sm:$0xff]  ;;  %v454_v49 = vld [vmem:[%s6871_s17 + $0x68] sm:$0xff]  ;;  %v455_v50 = vld [vmem:[%s6871_s17 + $0x70] sm:$0xff] }
  0x17   : > { %v551_v21 = vmax.f32 %v519_v15, 0.0  ;;  %v552_v22 = vmax.f32 %v520_v16, 0.0  ;;  %v553_v23 = vmax.f32 %v521_v17, 0.0  ;;  %v525_v31 = vadd.f32 %v6876_v2, %v486_v20  ;;  %v456_v57 = vld [vmem:[%s6871_s17 + $0x78] sm:$0xff]  ;;  %v457_v58 = vld [vmem:[%s6871_s17 + $0x80] sm:$0xff]  ;;  %v458_v3 = vld [vmem:[%s6871_s17 + $0x88] sm:$0xff] }
  0x18   : > { %v554_v27 = vmax.f32 %v522_v18, 0.0  ;;  %v555_v30 = vmax.f32 %v523_v24, 0.0  ;;  %v488_v32 = vmul.f32 %v6864_v1, %v449_v26  ;;  %v556_v35 = vmax.f32 %v524_v28, 0.0  ;;  %v459_v4 = vld [vmem:[%s6871_s17 + $0x90] sm:$0xff]  ;;  %v460_v11 = vld [vmem:[%s6871_s17 + $0x98] sm:$0xff]  ;;  %v461_v12 = vld [vmem:[%s6871_s17 + $0xa0] sm:$0xff] }
  0x19   : > { %5921 = vmatprep.mubr.msk.f32.mxu0 %vm591_vm1, %v551_v21  ;;  %v526_v36 = vadd.f32 %v6876_v2, %v487_v29  ;;  %v489_v37 = vmul.f32 %v6864_v1, %v450_v33  ;;  %v557_v38 = vmax.f32 %v525_v31, 0.0  ;;  %v490_v40 = vmul.f32 %v6864_v1, %v451_v34  ;;  %v462_v19 = vld [vmem:[%s6871_s17 + $0xa8] sm:$0xff]  ;;  %v463_v20 = vld [vmem:[%s6871_s17 + $0xb0] sm:$0xff]  ;;  %v465_v28 = vld [vmem:[%s6871_s17 + $0xc0] sm:$0xff] }
  0x1a   : > { %5922 = vmatmul.mubr.msk.f32.vlgmr.msra.gmra.mrb[0].mxu0 %vm591_vm1, %v552_v22  ;;  %v527_v39 = vadd.f32 %v6876_v2, %v488_v32  ;;  %v491_v45 = vmul.f32 %v6864_v1, %v452_v41  ;;  %v492_v48 = vmul.f32 %v6864_v1, %v453_v42  ;;  %v493_v53 = vmul.f32 %v6864_v1, %v454_v49 }
  0x1b   : > { %5924 = vmatprep.mubr.msk.f32.mxu0 %vm591_vm1, %v553_v23  ;;  %v558_v43 = vmax.f32 %v526_v36, 0.0  ;;  %v528_v44 = vadd.f32 %v6876_v2, %v489_v37  ;;  %v529_v47 = vadd.f32 %v6876_v2, %v490_v40  ;;  %v494_v56 = vmul.f32 %v6864_v1, %v455_v50  ;;  %v467_v36 = vld [vmem:[%s6871_s17 + $0xd0] sm:$0xff] }
  0x1c   : > { %v559_v46 = vmax.f32 %v527_v39, 0.0  ;;  %v530_v52 = vadd.f32 %v6876_v2, %v491_v45  ;;  %v531_v55 = vadd.f32 %v6876_v2, %v492_v48  ;;  %v532_v60 = vadd.f32 %v6876_v2, %v493_v53 }
  0x1d   : > { %v560_v51 = vmax.f32 %v528_v44, 0.0  ;;  %v561_v54 = vmax.f32 %v529_v47, 0.0  ;;  %v495_v61 = vmul.f32 %v6864_v1, %v456_v57  ;;  %v533_v63 = vadd.f32 %v6876_v2, %v494_v56  ;;  %v469_v44 = vld [vmem:[%s6871_s17 + $0xe0] sm:$0xff] }
  0x1e   : > { %5925 = vmatmul.mubr.msk.f32.gmra.mrb[2].mxu0 %vm591_vm1, %v554_v27  ;;  %v562_v59 = vmax.f32 %v530_v52, 0.0  ;;  %v563_v62 = vmax.f32 %v531_v55, 0.0  ;;  %v496_v0 = vmul.f32 %v6864_v1, %v457_v58  ;;  %v564_v5 = vmax.f32 %v532_v60, 0.0  ;;  %v464_v27 = vld [vmem:[%s6871_s17 + $0xb8] sm:$0xff]  ;;  %v471_v52 = vld [vmem:[%s6871_s17 + $0xf0] sm:$0xff] }
  0x1f   : > { %5927 = vmatprep.mubr.msk.f32.mxu0 %vm591_vm1, %v555_v30  ;;  %v534_v6 = vadd.f32 %v6876_v2, %v495_v61  ;;  %v497_v7 = vmul.f32 %v6864_v1, %v458_v3  ;;  %v565_v8 = vmax.f32 %v533_v63, 0.0  ;;  %v498_v10 = vmul.f32 %v6864_v1, %v459_v4 }
  0x20   : > { %v535_v9 = vadd.f32 %v6876_v2, %v496_v0  ;;  %v499_v15 = vmul.f32 %v6864_v1, %v460_v11  ;;  %v500_v18 = vmul.f32 %v6864_v1, %v461_v12  ;;  %v501_v23 = vmul.f32 %v6864_v1, %v462_v19  ;;  %v1148_v11 = vld [vmem:[%s8374_s7] sm:$0x3] }
  0x21   : > { %v566_v13 = vmax.f32 %v534_v6, 0.0  ;;  %v536_v14 = vadd.f32 %v6876_v2, %v497_v7  ;;  %v537_v17 = vadd.f32 %v6876_v2, %v498_v10  ;;  %v502_v26 = vmul.f32 %v6864_v1, %v463_v20  ;;  %v7079_v10 = vld [vmem:[%s8374_s7 + $0x8] sm:$0x3]  ;;  %v7091_v12 = vld [vmem:[%s8371_s4] ss:$0 sm:$0xff] }
  0x22   : > { %5928 = vmatmul.mubr.msk.f32.gmra.mrb[4].mxu0 %vm591_vm1, %v556_v35  ;;  %v567_v16 = vmax.f32 %v535_v9, 0.0  ;;  %v538_v22 = vadd.f32 %v6876_v2, %v499_v15  ;;  %v539_v25 = vadd.f32 %v6876_v2, %v500_v18  ;;  %v540_v30 = vadd.f32 %v6876_v2, %v501_v23  ;;  %v466_v35 = vld [vmem:[%s6871_s17 + $0xc8] sm:$0xff]  ;;  %v7070_v9 = vld [vmem:[%s8374_s7 + $0x6] sm:$0x3] }
  0x23   : > { %5930 = vmatprep.mubr.msk.f32.mxu0 %vm591_vm1, %v557_v38  ;;  %v568_v21 = vmax.f32 %v536_v14, 0.0  ;;  %v569_v24 = vmax.f32 %v537_v17, 0.0  ;;  %v503_v31 = vmul.f32 %v6864_v1, %v464_v27  ;;  %v541_v33 = vadd.f32 %v6876_v2, %v502_v26  ;;  %6469 = vmatprep.subr.msk.mxu1 %vm1279_vm4, %v7070_v9  ;;  %v7096_v14 = vld [vmem:[%s8372_s5] ss:$0 sm:$0xff] }
  0x24   : > { %v570_v29 = vmax.f32 %v538_v22, 0.0  ;;  %v571_v32 = vmax.f32 %v539_v25, 0.0  ;;  %v504_v34 = vmul.f32 %v6864_v1, %v465_v28  ;;  %v572_v37 = vmax.f32 %v540_v30, 0.0  ;;  %6470 = vmatpush3.msk.msra.mxu1 %vm1279_vm4, %v7070_v9  ;;  %v7102_v17 = vld [vmem:[%s8373_s6] ss:$0 sm:$0xff] }
  0x25   : > { %v542_v38 = vadd.f32 %v6876_v2, %v503_v31  ;;  %v505_v39 = vmul.f32 %v6864_v1, %v466_v35  ;;  %v573_v40 = vmax.f32 %v541_v33, 0.0  ;;  %v506_v42 = vmul.f32 %v6864_v1, %v467_v36  ;;  %6169 = vmatprep.subr.msk.mxu1 %vm1279_vm4, %v7079_v10 }
  0x26   : > { %5931 = vmatmul.mubr.msk.f32.gmra.mrb[6].mxu0 %vm591_vm1, %v558_v43  ;;  %v543_v41 = vadd.f32 %v6876_v2, %v504_v34  ;;  %v468_v43 = vld [vmem:[%s6871_s17 + $0xd8] sm:$0xff]  ;;  %v508_v50 = vmul.f32 %v6864_v1, %v469_v44  ;;  %v510_v58 = vmul.f32 %v6864_v1, %v471_v52 }
  0x27   : > { %5933 = vmatprep.mubr.msk.f32.mxu0 %vm591_vm1, %v559_v46  ;;  %v574_v45 = vmax.f32 %v542_v38, 0.0  ;;  %v544_v46 = vadd.f32 %v6876_v2, %v505_v39  ;;  %v507_v47 = vmul.f32 %v6864_v1, %v468_v43  ;;  %v545_v49 = vadd.f32 %v6876_v2, %v506_v42  ;;  %v7124_v42 = vld [vmem:[%s8374_s7 + $0x4] sm:$0x3] }
  0x28   : > { %v575_v48 = vmax.f32 %v543_v41, 0.0  ;;  %v547_v57 = vadd.f32 %v6876_v2, %v508_v50  ;;  %v549_v0 = vadd.f32 %v6876_v2, %v510_v58 }
  0x29   : > { %v576_v53 = vmax.f32 %v544_v46, 0.0  ;;  %v577_v56 = vmax.f32 %v545_v49, 0.0 }
  0x2a   : > { %5934 = vmatmul.mubr.msk.f32.gmra.mrb[8].mxu0 %vm591_vm1, %v560_v51  ;;  %v470_v51 = vld [vmem:[%s6871_s17 + $0xe8] sm:$0xff]  ;;  %v579_v63 = vmax.f32 %v547_v57, 0.0 }
  0x2b   : > { %5936 = vmatprep.mubr.msk.f32.mxu0 %vm591_vm1, %v561_v54  ;;  %v546_v54 = vadd.f32 %v6876_v2, %v507_v47  ;;  %v509_v55 = vmul.f32 %v6864_v1, %v470_v51 }
  0x2d   : > { %v578_v60 = vmax.f32 %v546_v54, 0.0  ;;  %v548_v61 = vadd.f32 %v6876_v2, %v509_v55 }
  0x2e   : > { %5937 = vmatmul.mubr.msk.f32.gmra.mrb[10].mxu0 %vm591_vm1, %v562_v59  ;;  %v472_v59 = vld [vmem:[%s6871_s17 + $0xf8] sm:$0xff] }
  0x2f   : > { %5939 = vmatprep.mubr.msk.f32.mxu0 %vm591_vm1, %v563_v62  ;;  %v511_v62 = vmul.f32 %v6864_v1, %v472_v59  ;;  %v580_v3 = vmax.f32 %v548_v61, 0.0  ;;  %v6776_v1 = vmov 0.0  }
  0x30   : > { %1033 = vst.msk [vmem:[#allocation2 + $0x20] sm:$0xff] %vm1027_vm2, %v6776_v1  ;;  %1028 = vst.msk [vmem:[#allocation2] sm:$0xff] %vm1027_vm2, %v6776_v1 }
  0x31   : > { %v550_v4 = vadd.f32 %v6876_v2, %v511_v62  ;;  %1029 = vst.msk [vmem:[#allocation2 + $0x8] sm:$0xff] %vm1027_vm2, %v6776_v1  ;;  %1032 = vst.msk [vmem:[#allocation2 + $0x18] sm:$0xff] %vm1027_vm2, %v6776_v1  ;;  %v5210_v2 = vld [vmem:[%s8374_s7 + $0x2] sm:$0x3] }
  0x32   : > { %5940 = vmatmul.mubr.msk.f32.gmra.mrb[12].mxu0 %vm591_vm1, %v564_v5  ;;  %v581_v5 = vmax.f32 %v549_v0, 0.0  ;;  %1035 = vst.msk [vmem:[#allocation2 + $0x30] sm:$0xff] %vm1027_vm2, %v6776_v1  ;;  %1036 = vst.msk [vmem:[#allocation2 + $0x38] sm:$0xff] %vm1027_vm2, %v6776_v1  ;;  %5969 = vmatprep.subr.msk.mxu0 %vm1279_vm4, %v5210_v2 }
  0x33   : > { %5942 = vmatprep.mubr.msk.f32.mxu0 %vm591_vm1, %v565_v8  ;;  %v582_v6 = vmax.f32 %v550_v4, 0.0  ;;  %1038 = vst.msk [vmem:[#allocation2 + $0x48] sm:$0xff] %vm1027_vm2, %v6776_v1  ;;  %1039 = vst.msk [vmem:[#allocation2 + $0x50] sm:$0xff] %vm1027_vm2, %v6776_v1  ;;  %5970 = vmatpush3.msk.msra.mxu0 %vm1279_vm4, %v5210_v2 }
  0x34   : > { %1041 = vst.msk [vmem:[#allocation2 + $0x60] sm:$0xff] %vm1027_vm2, %v6776_v1  ;;  %1042 = vst.msk [vmem:[#allocation2 + $0x68] sm:$0xff] %vm1027_vm2, %v6776_v1  ;;  %6019 = vmatprep.subr.msk.mxu0 %vm1279_vm4, %v1148_v11 }
  0x35   : > { %1044 = vst.msk [vmem:[#allocation2 + $0x78] sm:$0xff] %vm1027_vm2, %v6776_v1  ;;  %1045 = vst.msk [vmem:[#allocation2 + $0x80] sm:$0xff] %vm1027_vm2, %v6776_v1 }
  0x36   : > { %5943 = vmatmul.mubr.msk.f32.gmra.mrb[14].mxu0 %vm591_vm1, %v566_v13  ;;  %1047 = vst.msk [vmem:[#allocation2 + $0x90] sm:$0xff] %vm1027_vm2, %v6776_v1  ;;  %1048 = vst.msk [vmem:[#allocation2 + $0x98] sm:$0xff] %vm1027_vm2, %v6776_v1 }
  0x37   : > { %5945 = vmatprep.mubr.msk.f32.mxu0 %vm591_vm1, %v567_v16  ;;  %1050 = vst.msk [vmem:[#allocation2 + $0xa8] sm:$0xff] %vm1027_vm2, %v6776_v1  ;;  %1051 = vst.msk [vmem:[#allocation2 + $0xb0] sm:$0xff] %vm1027_vm2, %v6776_v1 }
  0x38   : > { %1053 = vst.msk [vmem:[#allocation2 + $0xc0] sm:$0xff] %vm1027_vm2, %v6776_v1  ;;  %1054 = vst.msk [vmem:[#allocation2 + $0xc8] sm:$0xff] %vm1027_vm2, %v6776_v1  ;;  %v1149_v7 = vld [vmem:[#allocation2 + $0x1] sm:$0xff] }
  0x39   : > { %1056 = vst.msk [vmem:[#allocation2 + $0xd8] sm:$0xff] %vm1027_vm2, %v6776_v1  ;;  %1057 = vst.msk [vmem:[#allocation2 + $0xe0] sm:$0xff] %vm1027_vm2, %v6776_v1 }
  0x3a   : > { %5946 = vmatmul.mubr.msk.f32.gmra.mrb[16].mxu0 %vm591_vm1, %v568_v21  ;;  %1059 = vst.msk [vmem:[#allocation2 + $0xf0] sm:$0xff] %vm1027_vm2, %v6776_v1  ;;  %1060 = vst.msk [vmem:[#allocation2 + $0xf8] sm:$0xff] %vm1027_vm2, %v6776_v1 }
  0x3b   : > { %5948 = vmatprep.mubr.msk.f32.mxu0 %vm591_vm1, %v569_v24  ;;  %1062 = vst.msk [vmem:[#allocation2 + $0x108] sm:$0xff] %vm1027_vm2, %v6776_v1  ;;  %1063 = vst.msk [vmem:[#allocation2 + $0x110] sm:$0xff] %vm1027_vm2, %v6776_v1 }
  0x3c   : > { %1065 = vst.msk [vmem:[#allocation2 + $0x120] sm:$0xff] %vm1027_vm2, %v6776_v1  ;;  %1066 = vst.msk [vmem:[#allocation2 + $0x128] sm:$0xff] %vm1027_vm2, %v6776_v1 }
  0x3d   : > { %1068 = vst.msk [vmem:[#allocation2 + $0x138] sm:$0xff] %vm1027_vm2, %v6776_v1  ;;  %1069 = vst.msk [vmem:[#allocation2 + $0x140] sm:$0xff] %vm1027_vm2, %v6776_v1 }
  0x3e   : > { %5949 = vmatmul.mubr.msk.f32.gmra.mrb[18].mxu0 %vm591_vm1, %v570_v29  ;;  %1071 = vst.msk [vmem:[#allocation2 + $0x150] sm:$0xff] %vm1027_vm2, %v6776_v1  ;;  %1072 = vst.msk [vmem:[#allocation2 + $0x158] sm:$0xff] %vm1027_vm2, %v6776_v1 }
  0x3f   : > { %5951 = vmatprep.mubr.msk.f32.mxu0 %vm591_vm1, %v571_v32  ;;  %1074 = vst.msk [vmem:[#allocation2 + $0x168] sm:$0xff] %vm1027_vm2, %v6776_v1  ;;  %1075 = vst.msk [vmem:[#allocation2 + $0x170] sm:$0xff] %vm1027_vm2, %v6776_v1 }
  0x40   : > { %1077 = vst.msk [vmem:[#allocation2 + $0x180] sm:$0xff] %vm1027_vm2, %v6776_v1  ;;  %1078 = vst.msk [vmem:[#allocation2 + $0x188] sm:$0xff] %vm1027_vm2, %v6776_v1 }
  0x41   : > { %1080 = vst.msk [vmem:[#allocation2 + $0x198] sm:$0xff] %vm1027_vm2, %v6776_v1  ;;  %1081 = vst.msk [vmem:[#allocation2 + $0x1a0] sm:$0xff] %vm1027_vm2, %v6776_v1 }
  0x42   : > { %5952 = vmatmul.mubr.msk.f32.gmra.mrb[20].mxu0 %vm591_vm1, %v572_v37  ;;  %1034 = vst.msk [vmem:[#allocation2 + $0x28] sm:$0x3] %vm1030_vm3, %v6776_v1  ;;  %1031 = vst.msk [vmem:[#allocation2 + $0x10] sm:$0x3] %vm1030_vm3, %v6776_v1 }
  0x43   : > { %5954 = vmatprep.mubr.msk.f32.mxu0 %vm591_vm1, %v573_v40  ;;  %1037 = vst.msk [vmem:[#allocation2 + $0x40] sm:$0x3] %vm1030_vm3, %v6776_v1  ;;  %1040 = vst.msk [vmem:[#allocation2 + $0x58] sm:$0x3] %vm1030_vm3, %v6776_v1 }
  0x44   : > { %1043 = vst.msk [vmem:[#allocation2 + $0x70] sm:$0x3] %vm1030_vm3, %v6776_v1  ;;  %1046 = vst.msk [vmem:[#allocation2 + $0x88] sm:$0x3] %vm1030_vm3, %v6776_v1 }
  0x45   : > { %1049 = vst.msk [vmem:[#allocation2 + $0xa0] sm:$0x3] %vm1030_vm3, %v6776_v1  ;;  %1052 = vst.msk [vmem:[#allocation2 + $0xb8] sm:$0x3] %vm1030_vm3, %v6776_v1 }
  0x46   : > { %5955 = vmatmul.mubr.msk.f32.gmra.mrb[22].mxu0 %vm591_vm1, %v574_v45  ;;  %1055 = vst.msk [vmem:[#allocation2 + $0xd0] sm:$0x3] %vm1030_vm3, %v6776_v1  ;;  %1058 = vst.msk [vmem:[#allocation2 + $0xe8] sm:$0x3] %vm1030_vm3, %v6776_v1 }
  0x47   : > { %5957 = vmatprep.mubr.msk.f32.mxu0 %vm591_vm1, %v575_v48  ;;  %1061 = vst.msk [vmem:[#allocation2 + $0x100] sm:$0x3] %vm1030_vm3, %v6776_v1  ;;  %1064 = vst.msk [vmem:[#allocation2 + $0x118] sm:$0x3] %vm1030_vm3, %v6776_v1 }
  0x48   : > { %1067 = vst.msk [vmem:[#allocation2 + $0x130] sm:$0x3] %vm1030_vm3, %v6776_v1  ;;  %1070 = vst.msk [vmem:[#allocation2 + $0x148] sm:$0x3] %vm1030_vm3, %v6776_v1 }
  0x49   : > { %1073 = vst.msk [vmem:[#allocation2 + $0x160] sm:$0x3] %vm1030_vm3, %v6776_v1  ;;  %1076 = vst.msk [vmem:[#allocation2 + $0x178] sm:$0x3] %vm1030_vm3, %v6776_v1  ;;  %v1150_v8 = vld [vmem:[#allocation2 + $0x9] sm:$0xff] }
  0x4a   : > { %5958 = vmatmul.mubr.msk.f32.gmra.mrb[24].mxu0 %vm591_vm1, %v576_v53  ;;  %1079 = vst.msk [vmem:[#allocation2 + $0x190] sm:$0x3] %vm1030_vm3, %v6776_v1  ;;  %1082 = vst.msk [vmem:[#allocation2 + $0x1a8] sm:$0x3] %vm1030_vm3, %v6776_v1 }
  0x4b   : > { %5960 = vmatprep.mubr.msk.f32.mxu0 %vm591_vm1, %v577_v56 }
  0x4e   : > { %5961 = vmatmul.mubr.msk.f32.gmra.mrb[26].mxu0 %vm591_vm1, %v578_v60 }
  0x4f   : > { %5963 = vmatprep.mubr.msk.f32.mxu0 %vm591_vm1, %v579_v63 }
  0x52   : > { %5964 = vmatmul.mubr.msk.f32.gmra.mrb[28].mxu0 %vm591_vm1, %v580_v3 }
  0x53   : > { %5966 = vmatprep.mubr.msk.f32.mxu0 %vm591_vm1, %v581_v5 }
  0x56   : > { %5967 = vmatmul.mubr.msk.f32.gmra.mrb[30].mxu0 %vm591_vm1, %v582_v6 }
  0x57   : > { %5971 = vmatprep.mubr.msk.f32.mxu0 %vm1027_vm2, %v1149_v7 }
  0x5a   : > { %5972 = vmatmul.mubr.msk.f32.vlgmr.msra.gmra.mrb[32].mxu0 %vm1027_vm2, %v1150_v8 }
  0x5b   : > { %6020 = vmatpush3.msk.msra.mxu0 %vm1279_vm4, %v1148_v11 }
  0x5c   : > { %6069 = vmatprep.subr.msk.mxu0 %vm1279_vm4, %v7124_v42 }
  0xed   : > { %v5923_v13 = vpop.f32.mrb[0].mxu0 }
  0xee   : > { %v764_v15 = vadd.f32 %v5923_v13, %v7091_v12  ;;  %v758_v16 = vpop.f32.mrb[1].mxu0 }
  0xef   : > { %v759_v18 = vadd.f32 %v7091_v12, %v758_v16 }
  0xf0   : > { %v925_v19 = vmul.f32 %v7096_v14, %v764_v15 }
  0xf1   : > { %v924_v20 = vmul.f32 %v7096_v14, %v759_v18  ;;  %v5926_v21 = vpop.f32.mrb[2].mxu0 }
  0xf2   : > { %v964_v22 = vadd.f32 %v7102_v17, %v925_v19  ;;  %v774_v23 = vadd.f32 %v5926_v21, %v7091_v12  ;;  %v768_v24 = vpop.f32.mrb[3].mxu0 }
  0xf3   : > { %v963_v25 = vadd.f32 %v7102_v17, %v924_v20  ;;  %v769_v26 = vadd.f32 %v7091_v12, %v768_v24 }
  0xf4   : > { %v996_v27 = vmax.f32 %v964_v22, 0.0  ;;  %v927_v28 = vmul.f32 %v7096_v14, %v774_v23 }
  0xf5   : > { %v995_v29 = vmax.f32 %v963_v25, 0.0  ;;  %v926_v30 = vmul.f32 %v7096_v14, %v769_v26  ;;  %v5929_v31 = vpop.f32.mrb[4].mxu0 }
  0xf6   : > { %1085 = vst.msk [vmem:[#allocation2 + $0x21] sm:$0xff] %vm1027_vm2, %v996_v27  ;;  %v966_v32 = vadd.f32 %v7102_v17, %v927_v28  ;;  %v784_v33 = vadd.f32 %v5929_v31, %v7091_v12  ;;  %v778_v34 = vpop.f32.mrb[5].mxu0 }
  0xf7   : > { %1084 = vst.msk [vmem:[#allocation2 + $0x19] sm:$0xff] %vm1027_vm2, %v995_v29  ;;  %v965_v35 = vadd.f32 %v7102_v17, %v926_v30  ;;  %v779_v36 = vadd.f32 %v7091_v12, %v778_v34 }
  0xf8   : > { %v998_v37 = vmax.f32 %v966_v32, 0.0  ;;  %v929_v38 = vmul.f32 %v7096_v14, %v784_v33 }
  0xf9   : > { %v997_v39 = vmax.f32 %v965_v35, 0.0  ;;  %v928_v40 = vmul.f32 %v7096_v14, %v779_v36  ;;  %v5932_v41 = vpop.f32.mrb[6].mxu0 }
  0xfa   : > { %1087 = vst.msk [vmem:[#allocation2 + $0x39] sm:$0xff] %vm1027_vm2, %v998_v37  ;;  %v968_v43 = vadd.f32 %v7102_v17, %v929_v38  ;;  %v794_v44 = vadd.f32 %v5932_v41, %v7091_v12  ;;  %v788_v45 = vpop.f32.mrb[7].mxu0 }
  0xfb   : > { %1086 = vst.msk [vmem:[#allocation2 + $0x31] sm:$0xff] %vm1027_vm2, %v997_v39  ;;  %v967_v46 = vadd.f32 %v7102_v17, %v928_v40  ;;  %v789_v47 = vadd.f32 %v7091_v12, %v788_v45 }
  0xfc   : > { %v1000_v48 = vmax.f32 %v968_v43, 0.0  ;;  %v931_v49 = vmul.f32 %v7096_v14, %v794_v44 }
  0xfd   : > { %v999_v50 = vmax.f32 %v967_v46, 0.0  ;;  %v930_v51 = vmul.f32 %v7096_v14, %v789_v47  ;;  %v5935_v52 = vpop.f32.mrb[8].mxu0  ;;  %v7146_v59 = vld [vmem:[#allocation2 + $0x21] sm:$0xff] }
  0xfe   : > { %1089 = vst.msk [vmem:[#allocation2 + $0x51] sm:$0xff] %vm1027_vm2, %v1000_v48  ;;  %v970_v53 = vadd.f32 %v7102_v17, %v931_v49  ;;  %v804_v54 = vadd.f32 %v5935_v52, %v7091_v12  ;;  %v798_v55 = vpop.f32.mrb[9].mxu0  ;;  %v7139_v56 = vld [vmem:[#allocation2 + $0x19] sm:$0xff] }
  0xff   : > { %1088 = vst.msk [vmem:[#allocation2 + $0x49] sm:$0xff] %vm1027_vm2, %v999_v50  ;;  %v969_v57 = vadd.f32 %v7102_v17, %v930_v51  ;;  %v799_v58 = vadd.f32 %v7091_v12, %v798_v55  ;;  %5974 = vmatprep.mubr.msk.f32.mxu0 %vm1027_vm2, %v7139_v56 }
 0x100   : > { %v1002_v60 = vmax.f32 %v970_v53, 0.0  ;;  %v933_v61 = vmul.f32 %v7096_v14, %v804_v54  ;;  %5975 = vmatmul.mubr.msk.f32.gmra.mrb[34].mxu0 %vm1027_vm2, %v7146_v59 }
 0x101   : > { %v1001_v62 = vmax.f32 %v969_v57, 0.0  ;;  %v932_v63 = vmul.f32 %v7096_v14, %v799_v58  ;;  %v5938_v0 = vpop.f32.mrb[10].mxu0  ;;  %v7162_v7 = vld [vmem:[#allocation2 + $0x39] sm:$0xff] }
 0x102   : > { %1091 = vst.msk [vmem:[#allocation2 + $0x69] sm:$0xff] %vm1027_vm2, %v1002_v60  ;;  %v972_v3 = vadd.f32 %v7102_v17, %v933_v61  ;;  %v814_v4 = vadd.f32 %v5938_v0, %v7091_v12  ;;  %v808_v5 = vpop.f32.mrb[11].mxu0  ;;  %v7155_v6 = vld [vmem:[#allocation2 + $0x31] sm:$0xff] }
 0x103   : > { %1090 = vst.msk [vmem:[#allocation2 + $0x61] sm:$0xff] %vm1027_vm2, %v1001_v62  ;;  %v971_v1 = vadd.f32 %v7102_v17, %v932_v63  ;;  %v809_v2 = vadd.f32 %v7091_v12, %v808_v5  ;;  %5977 = vmatprep.mubr.msk.f32.mxu0 %vm1027_vm2, %v7155_v6 }
 0x104   : > { %v1004_v8 = vmax.f32 %v972_v3, 0.0  ;;  %v935_v11 = vmul.f32 %v7096_v14, %v814_v4  ;;  %5978 = vmatmul.mubr.msk.f32.gmra.mrb[36].mxu0 %vm1027_vm2, %v7162_v7 }
 0x105   : > { %v1003_v13 = vmax.f32 %v971_v1, 0.0  ;;  %v934_v15 = vmul.f32 %v7096_v14, %v809_v2  ;;  %v5941_v16 = vpop.f32.mrb[12].mxu0  ;;  %v7178_v24 = vld [vmem:[#allocation2 + $0x51] sm:$0xff] }
 0x106   : > { %1093 = vst.msk [vmem:[#allocation2 + $0x81] sm:$0xff] %vm1027_vm2, %v1004_v8  ;;  %v974_v18 = vadd.f32 %v7102_v17, %v935_v11  ;;  %v824_v19 = vadd.f32 %v5941_v16, %v7091_v12  ;;  %v818_v20 = vpop.f32.mrb[13].mxu0  ;;  %v7171_v21 = vld [vmem:[#allocation2 + $0x49] sm:$0xff] }
 0x107   : > { %1092 = vst.msk [vmem:[#allocation2 + $0x79] sm:$0xff] %vm1027_vm2, %v1003_v13  ;;  %v973_v22 = vadd.f32 %v7102_v17, %v934_v15  ;;  %v819_v23 = vadd.f32 %v7091_v12, %v818_v20  ;;  %5980 = vmatprep.mubr.msk.f32.mxu0 %vm1027_vm2, %v7171_v21 }
 0x108   : > { %v1006_v25 = vmax.f32 %v974_v18, 0.0  ;;  %v937_v26 = vmul.f32 %v7096_v14, %v824_v19  ;;  %5981 = vmatmul.mubr.msk.f32.gmra.mrb[38].mxu0 %vm1027_vm2, %v7178_v24 }
 0x109   : > { %v1005_v27 = vmax.f32 %v973_v22, 0.0  ;;  %v936_v28 = vmul.f32 %v7096_v14, %v819_v23  ;;  %v5944_v29 = vpop.f32.mrb[14].mxu0  ;;  %v7194_v36 = vld [vmem:[#allocation2 + $0x69] sm:$0xff] }
 0x10a   : > { %1095 = vst.msk [vmem:[#allocation2 + $0x99] sm:$0xff] %vm1027_vm2, %v1006_v25  ;;  %v976_v30 = vadd.f32 %v7102_v17, %v937_v26  ;;  %v834_v31 = vadd.f32 %v5944_v29, %v7091_v12  ;;  %v828_v32 = vpop.f32.mrb[15].mxu0  ;;  %v7187_v33 = vld [vmem:[#allocation2 + $0x61] sm:$0xff] }
 0x10b   : > { %1094 = vst.msk [vmem:[#allocation2 + $0x91] sm:$0xff] %vm1027_vm2, %v1005_v27  ;;  %v975_v34 = vadd.f32 %v7102_v17, %v936_v28  ;;  %v829_v35 = vadd.f32 %v7091_v12, %v828_v32  ;;  %5983 = vmatprep.mubr.msk.f32.mxu0 %vm1027_vm2, %v7187_v33 }
 0x10c   : > { %v1008_v37 = vmax.f32 %v976_v30, 0.0  ;;  %v939_v38 = vmul.f32 %v7096_v14, %v834_v31  ;;  %5984 = vmatmul.mubr.msk.f32.gmra.mrb[40].mxu0 %vm1027_vm2, %v7194_v36 }
 0x10d   : > { %v1007_v39 = vmax.f32 %v975_v34, 0.0  ;;  %v938_v40 = vmul.f32 %v7096_v14, %v829_v35  ;;  %v5947_v41 = vpop.f32.mrb[16].mxu0  ;;  %v7210_v49 = vld [vmem:[#allocation2 + $0x81] sm:$0xff] }
 0x10e   : > { %1097 = vst.msk [vmem:[#allocation2 + $0xb1] sm:$0xff] %vm1027_vm2, %v1008_v37  ;;  %v978_v43 = vadd.f32 %v7102_v17, %v939_v38  ;;  %v844_v44 = vadd.f32 %v5947_v41, %v7091_v12  ;;  %v838_v45 = vpop.f32.mrb[17].mxu0  ;;  %v7203_v46 = vld [vmem:[#allocation2 + $0x79] sm:$0xff] }
 0x10f   : > { %1096 = vst.msk [vmem:[#allocation2 + $0xa9] sm:$0xff] %vm1027_vm2, %v1007_v39  ;;  %v977_v47 = vadd.f32 %v7102_v17, %v938_v40  ;;  %v839_v48 = vadd.f32 %v7091_v12, %v838_v45  ;;  %5986 = vmatprep.mubr.msk.f32.mxu0 %vm1027_vm2, %v7203_v46 }
 0x110   : > { %v1010_v50 = vmax.f32 %v978_v43, 0.0  ;;  %v941_v51 = vmul.f32 %v7096_v14, %v844_v44  ;;  %5987 = vmatmul.mubr.msk.f32.gmra.mrb[42].mxu0 %vm1027_vm2, %v7210_v49 }
 0x111   : > { %v1009_v52 = vmax.f32 %v977_v47, 0.0  ;;  %v940_v53 = vmul.f32 %v7096_v14, %v839_v48  ;;  %v5950_v54 = vpop.f32.mrb[18].mxu0  ;;  %v7226_v63 = vld [vmem:[#allocation2 + $0x99] sm:$0xff] }
 0x112   : > { %1099 = vst.msk [vmem:[#allocation2 + $0xc9] sm:$0xff] %vm1027_vm2, %v1010_v50  ;;  %v980_v55 = vadd.f32 %v7102_v17, %v941_v51  ;;  %v854_v57 = vadd.f32 %v5950_v54, %v7091_v12  ;;  %v848_v58 = vpop.f32.mrb[19].mxu0  ;;  %v7219_v60 = vld [vmem:[#allocation2 + $0x91] sm:$0xff] }
 0x113   : > { %1098 = vst.msk [vmem:[#allocation2 + $0xc1] sm:$0xff] %vm1027_vm2, %v1009_v52  ;;  %v979_v61 = vadd.f32 %v7102_v17, %v940_v53  ;;  %v849_v62 = vadd.f32 %v7091_v12, %v848_v58  ;;  %5989 = vmatprep.mubr.msk.f32.mxu0 %vm1027_vm2, %v7219_v60  ;;  %v7285_v52 = vld [vmem:[%s8374_s7 + $0xa] sm:$0x3] }
 0x114   : > { %v1012_v0 = vmax.f32 %v980_v55, 0.0  ;;  %v943_v3 = vmul.f32 %v7096_v14, %v854_v57  ;;  %5990 = vmatmul.mubr.msk.f32.gmra.mrb[44].mxu0 %vm1027_vm2, %v7226_v63 }
 0x115   : > { %v1011_v4 = vmax.f32 %v979_v61, 0.0  ;;  %v942_v5 = vmul.f32 %v7096_v14, %v849_v62  ;;  %v5953_v1 = vpop.f32.mrb[20].mxu0  ;;  %v7242_v18 = vld [vmem:[#allocation2 + $0xb1] sm:$0xff] }
 0x116   : > { %1101 = vst.msk [vmem:[#allocation2 + $0xe1] sm:$0xff] %vm1027_vm2, %v1012_v0  ;;  %v982_v2 = vadd.f32 %v7102_v17, %v943_v3  ;;  %v864_v8 = vadd.f32 %v5953_v1, %v7091_v12  ;;  %v858_v11 = vpop.f32.mrb[21].mxu0  ;;  %v7235_v13 = vld [vmem:[#allocation2 + $0xa9] sm:$0xff] }
 0x117   : > { %1100 = vst.msk [vmem:[#allocation2 + $0xd9] sm:$0xff] %vm1027_vm2, %v1011_v4  ;;  %v981_v15 = vadd.f32 %v7102_v17, %v942_v5  ;;  %v859_v16 = vadd.f32 %v7091_v12, %v858_v11  ;;  %5992 = vmatprep.mubr.msk.f32.mxu0 %vm1027_vm2, %v7235_v13 }
 0x118   : > { %v1014_v19 = vmax.f32 %v982_v2, 0.0  ;;  %v945_v20 = vmul.f32 %v7096_v14, %v864_v8  ;;  %5993 = vmatmul.mubr.msk.f32.gmra.mrb[46].mxu0 %vm1027_vm2, %v7242_v18 }
 0x119   : > { %v1013_v22 = vmax.f32 %v981_v15, 0.0  ;;  %v944_v23 = vmul.f32 %v7096_v14, %v859_v16  ;;  %v5956_v25 = vpop.f32.mrb[22].mxu0  ;;  %v7258_v32 = vld [vmem:[#allocation2 + $0xc9] sm:$0xff] }
 0x11a   : > { %1103 = vst.msk [vmem:[#allocation2 + $0xf9] sm:$0xff] %vm1027_vm2, %v1014_v19  ;;  %v984_v26 = vadd.f32 %v7102_v17, %v945_v20  ;;  %v874_v27 = vadd.f32 %v5956_v25, %v7091_v12  ;;  %v868_v28 = vpop.f32.mrb[23].mxu0  ;;  %v7251_v29 = vld [vmem:[#allocation2 + $0xc1] sm:$0xff] }
 0x11b   : > { %1102 = vst.msk [vmem:[#allocation2 + $0xf1] sm:$0xff] %vm1027_vm2, %v1013_v22  ;;  %v983_v30 = vadd.f32 %v7102_v17, %v944_v23  ;;  %v869_v31 = vadd.f32 %v7091_v12, %v868_v28  ;;  %5995 = vmatprep.mubr.msk.f32.mxu0 %vm1027_vm2, %v7251_v29 }
 0x11c   : > { %v1016_v34 = vmax.f32 %v984_v26, 0.0  ;;  %v947_v35 = vmul.f32 %v7096_v14, %v874_v27  ;;  %5996 = vmatmul.mubr.msk.f32.gmra.mrb[48].mxu0 %vm1027_vm2, %v7258_v32 }
 0x11d   : > { %v1015_v37 = vmax.f32 %v983_v30, 0.0  ;;  %v946_v38 = vmul.f32 %v7096_v14, %v869_v31  ;;  %v5959_v39 = vpop.f32.mrb[24].mxu0  ;;  %v7280_v51 = vld [vmem:[#allocation2 + $0xe1] sm:$0xff] }
 0x11e   : > { %1105 = vst.msk [vmem:[#allocation2 + $0x111] sm:$0xff] %vm1027_vm2, %v1016_v34  ;;  %v986_v40 = vadd.f32 %v7102_v17, %v947_v35  ;;  %v884_v41 = vadd.f32 %v5959_v39, %v7091_v12  ;;  %v878_v43 = vpop.f32.mrb[25].mxu0  ;;  %v7267_v44 = vld [vmem:[#allocation2 + $0xd9] sm:$0xff] }
 0x11f   : > { %v7269_v45 = vld [vmem:[#allocation2 + $0xd8] sm:$0xff]  ;;  %v7271_v47 = vld [vmem:[#allocation2 + $0xe0] sm:$0xff]  ;;  %1104 = vst.msk [vmem:[#allocation2 + $0x109] sm:$0xff] %vm1027_vm2, %v1015_v37  ;;  %v985_v48 = vadd.f32 %v7102_v17, %v946_v38  ;;  %v879_v50 = vadd.f32 %v7091_v12, %v878_v43  ;;  %5998 = vmatprep.mubr.msk.f32.mxu0 %vm1027_vm2, %v7267_v44 }
 0x120   : > { %6145 = vmatprep.mubr.msk.f32.mxu1 %vm1027_vm2, %v7269_v45  ;;  %v1018_v53 = vmax.f32 %v986_v40, 0.0  ;;  %v949_v54 = vmul.f32 %v7096_v14, %v884_v41  ;;  %5999 = vmatmul.mubr.msk.f32.gmra.mrb[50].mxu0 %vm1027_vm2, %v7280_v51 }
 0x121   : > { %6146 = vmatmul.mubr.msk.f32.vlgmr.msra.gmra.mrb[0].mxu1 %vm1027_vm2, %v7271_v47  ;;  %v1017_v55 = vmax.f32 %v985_v48, 0.0  ;;  %v948_v57 = vmul.f32 %v7096_v14, %v879_v50  ;;  %v5962_v58 = vpop.f32.mrb[26].mxu0  ;;  %v7313_v2 = vld [vmem:[#allocation2 + $0xf9] sm:$0xff] }
 0x122   : > { %6170 = vmatpush3.msk.msra.mxu1 %vm1279_vm4, %v7079_v10  ;;  %1107 = vst.msk [vmem:[#allocation2 + $0x129] sm:$0xff] %vm1027_vm2, %v1018_v53  ;;  %v988_v61 = vadd.f32 %v7102_v17, %v949_v54  ;;  %v894_v62 = vadd.f32 %v5962_v58, %v7091_v12  ;;  %v888_v0 = vpop.f32.mrb[27].mxu0  ;;  %v7298_v3 = vld [vmem:[#allocation2 + $0xf1] sm:$0xff] }
 0x123   : > { %v7300_v4 = vld [vmem:[#allocation2 + $0xf0] sm:$0xff]  ;;  %v7302_v5 = vld [vmem:[#allocation2 + $0xf8] sm:$0xff]  ;;  %6219 = vmatprep.subr.msk.mxu1 %vm1279_vm4, %v7285_v52  ;;  %1106 = vst.msk [vmem:[#allocation2 + $0x121] sm:$0xff] %vm1027_vm2, %v1017_v55  ;;  %v987_v10 = vadd.f32 %v7102_v17, %v948_v57  ;;  %v889_v1 = vadd.f32 %v7091_v12, %v888_v0  ;;  %6001 = vmatprep.mubr.msk.f32.mxu0 %vm1027_vm2, %v7298_v3 }
 0x124   : > { %6148 = vmatprep.mubr.msk.f32.mxu1 %vm1027_vm2, %v7300_v4  ;;  %v1020_v8 = vmax.f32 %v988_v61, 0.0  ;;  %v951_v11 = vmul.f32 %v7096_v14, %v894_v62  ;;  %6002 = vmatmul.mubr.msk.f32.gmra.mrb[52].mxu0 %vm1027_vm2, %v7313_v2 }
 0x125   : > { %6149 = vmatmul.mubr.msk.f32.gmra.mrb[2].mxu1 %vm1027_vm2, %v7302_v5  ;;  %v1019_v15 = vmax.f32 %v987_v10, 0.0  ;;  %v950_v16 = vmul.f32 %v7096_v14, %v889_v1  ;;  %v5965_v19 = vpop.f32.mrb[28].mxu0  ;;  %v7337_v31 = vld [vmem:[#allocation2 + $0x111] sm:$0xff] }
 0x126   : > { %1109 = vst.msk [vmem:[#allocation2 + $0x141] sm:$0xff] %vm1027_vm2, %v1020_v8  ;;  %v990_v20 = vadd.f32 %v7102_v17, %v951_v11  ;;  %v904_v22 = vadd.f32 %v5965_v19, %v7091_v12  ;;  %v898_v23 = vpop.f32.mrb[29].mxu0  ;;  %v7324_v25 = vld [vmem:[#allocation2 + $0x109] sm:$0xff] }
 0x127   : > { %v7326_v26 = vld [vmem:[#allocation2 + $0x108] sm:$0xff]  ;;  %v7328_v27 = vld [vmem:[#allocation2 + $0x110] sm:$0xff]  ;;  %1108 = vst.msk [vmem:[#allocation2 + $0x139] sm:$0xff] %vm1027_vm2, %v1019_v15  ;;  %v989_v28 = vadd.f32 %v7102_v17, %v950_v16  ;;  %v899_v30 = vadd.f32 %v7091_v12, %v898_v23  ;;  %6004 = vmatprep.mubr.msk.f32.mxu0 %vm1027_vm2, %v7324_v25  ;;  %v1116_v23 = vld [vmem:[#allocation2] sm:$0xff] }
 0x128   : > { %6151 = vmatprep.mubr.msk.f32.mxu1 %vm1027_vm2, %v7326_v26  ;;  %v1022_v34 = vmax.f32 %v990_v20, 0.0  ;;  %v953_v35 = vmul.f32 %v7096_v14, %v904_v22  ;;  %6005 = vmatmul.mubr.msk.f32.gmra.mrb[54].mxu0 %vm1027_vm2, %v7337_v31 }
 0x129   : > { %6152 = vmatmul.mubr.msk.f32.gmra.mrb[4].mxu1 %vm1027_vm2, %v7328_v27  ;;  %v1021_v37 = vmax.f32 %v989_v28, 0.0  ;;  %v952_v38 = vmul.f32 %v7096_v14, %v899_v30  ;;  %v5968_v39 = vpop.f32.mrb[30].mxu0  ;;  %v7361_v57 = vld [vmem:[#allocation2 + $0x129] sm:$0xff] }
 0x12a   : > { %1111 = vst.msk [vmem:[#allocation2 + $0x159] sm:$0xff] %vm1027_vm2, %v1022_v34  ;;  %v992_v40 = vadd.f32 %v7102_v17, %v953_v35  ;;  %v914_v41 = vadd.f32 %v5968_v39, %v7091_v12  ;;  %v908_v43 = vpop.f32.mrb[31].mxu0  ;;  %v7348_v48 = vld [vmem:[#allocation2 + $0x121] sm:$0xff] }
 0x12b   : > { %v7350_v50 = vld [vmem:[#allocation2 + $0x120] sm:$0xff]  ;;  %v7352_v53 = vld [vmem:[#allocation2 + $0x128] sm:$0xff]  ;;  %1110 = vst.msk [vmem:[#allocation2 + $0x151] sm:$0xff] %vm1027_vm2, %v1021_v37  ;;  %v991_v54 = vadd.f32 %v7102_v17, %v952_v38  ;;  %v909_v55 = vadd.f32 %v7091_v12, %v908_v43  ;;  %6007 = vmatprep.mubr.msk.f32.mxu0 %vm1027_vm2, %v7348_v48 }
 0x12c   : > { %6154 = vmatprep.mubr.msk.f32.mxu1 %vm1027_vm2, %v7350_v50  ;;  %v1024_v58 = vmax.f32 %v992_v40, 0.0  ;;  %v955_v61 = vmul.f32 %v7096_v14, %v914_v41  ;;  %6008 = vmatmul.mubr.msk.f32.gmra.mrb[56].mxu0 %vm1027_vm2, %v7361_v57  ;;  %v1117_v37 = vld [vmem:[#allocation2 + $0x8] sm:$0xff]  ;;  %v7433_v40 = vld [vmem:[#allocation2 + $0x18] sm:$0xff]  ;;  %v7441_v41 = vld [vmem:[#allocation2 + $0x20] sm:$0xff] }
 0x12d   : > { %6155 = vmatmul.mubr.msk.f32.gmra.mrb[6].mxu1 %vm1027_vm2, %v7352_v53  ;;  %v1023_v62 = vmax.f32 %v991_v54, 0.0  ;;  %v954_v12 = vmul.f32 %v7096_v14, %v909_v55  ;;  %v7383_v14 = vld [vmem:[#allocation2 + $0x141] sm:$0xff]  ;;  %v7446_v43 = vld [vmem:[%s8374_s7 + $0xc] sm:$0x3] }
 0x12e   : > { %1113 = vst.msk [vmem:[#allocation2 + $0x171] sm:$0xff] %vm1027_vm2, %v1024_v58  ;;  %v994_v0 = vadd.f32 %v7102_v17, %v955_v61  ;;  %v7371_v10 = vld [vmem:[#allocation2 + $0x139] sm:$0xff]  ;;  %v1835_v55 = vld [vmem:[#allocation2 + $0x22] sm:$0xff]  ;;  %v7615_v58 = vld [vmem:[%s8374_s7 + $0xe] sm:$0x3] }
 0x12f   : > { %v7373_v1 = vld [vmem:[#allocation2 + $0x138] sm:$0xff]  ;;  %v7375_v8 = vld [vmem:[#allocation2 + $0x140] sm:$0xff]  ;;  %1112 = vst.msk [vmem:[#allocation2 + $0x169] sm:$0xff] %vm1027_vm2, %v1023_v62  ;;  %v993_v11 = vadd.f32 %v7102_v17, %v954_v12  ;;  %6010 = vmatprep.mubr.msk.f32.mxu0 %vm1027_vm2, %v7371_v10  ;;  %v7635_v62 = vld [vmem:[#allocation2 + $0x4a] sm:$0xff] }
 0x130   : > { %6157 = vmatprep.mubr.msk.f32.mxu1 %vm1027_vm2, %v7373_v1  ;;  %v1026_v15 = vmax.f32 %v994_v0, 0.0  ;;  %6011 = vmatmul.mubr.msk.f32.gmra.mrb[58].mxu0 %vm1027_vm2, %v7383_v14  ;;  %v1834_v54 = vld [vmem:[#allocation2 + $0x1a] sm:$0xff]  ;;  %v7619_v61 = vld [vmem:[#allocation2 + $0x32] sm:$0xff]  ;;  %v7647_v0 = vld [vmem:[#allocation2 + $0x62] sm:$0xff] }
 0x131   : > { %6158 = vmatmul.mubr.msk.f32.gmra.mrb[8].mxu1 %vm1027_vm2, %v7375_v8  ;;  %v1025_v16 = vmax.f32 %v993_v11, 0.0  ;;  %v7401_v22 = vld [vmem:[#allocation2 + $0x159] sm:$0xff]  ;;  %v7653_v11 = vld [vmem:[#allocation2 + $0x6a] sm:$0xff] }
 0x132   : > { %1115 = vst.msk [vmem:[#allocation2 + $0x189] sm:$0xff] %vm1027_vm2, %v1026_v15  ;;  %v7390_v19 = vld [vmem:[#allocation2 + $0x151] sm:$0xff]  ;;  %v7659_v15 = vld [vmem:[#allocation2 + $0x7a] sm:$0xff] }
 0x133   : > { %v7392_v17 = vld [vmem:[#allocation2 + $0x150] sm:$0xff]  ;;  %v7394_v20 = vld [vmem:[#allocation2 + $0x158] sm:$0xff]  ;;  %1114 = vst.msk [vmem:[#allocation2 + $0x181] sm:$0xff] %vm1027_vm2, %v1025_v16  ;;  %6013 = vmatprep.mubr.msk.f32.mxu0 %vm1027_vm2, %v7390_v19  ;;  %v7665_v16 = vld [vmem:[#allocation2 + $0x82] sm:$0xff] }
 0x134   : > { %6160 = vmatprep.mubr.msk.f32.mxu1 %vm1027_vm2, %v7392_v17  ;;  %6014 = vmatmul.mubr.msk.f32.gmra.mrb[60].mxu0 %vm1027_vm2, %v7401_v22  ;;  %v7641_v12 = vld [vmem:[#allocation2 + $0x52] sm:$0xff] }
 0x135   : > { %6161 = vmatmul.mubr.msk.f32.gmra.mrb[10].mxu1 %vm1027_vm2, %v7394_v20  ;;  %v7417_v35 = vld [vmem:[#allocation2 + $0x171] sm:$0xff] }
 0x136   : > { %v7407_v28 = vld [vmem:[#allocation2 + $0x169] sm:$0xff] }
 0x137   : > { %v7409_v30 = vld [vmem:[#allocation2 + $0x168] sm:$0xff]  ;;  %v7411_v34 = vld [vmem:[#allocation2 + $0x170] sm:$0xff]  ;;  %6016 = vmatprep.mubr.msk.f32.mxu0 %vm1027_vm2, %v7407_v28 }
 0x138   : > { %6163 = vmatprep.mubr.msk.f32.mxu1 %vm1027_vm2, %v7409_v30  ;;  %6017 = vmatmul.mubr.msk.f32.gmra.mrb[62].mxu0 %vm1027_vm2, %v7417_v35 }
 0x139   : > { %6164 = vmatmul.mubr.msk.f32.gmra.mrb[12].mxu1 %vm1027_vm2, %v7411_v34  ;;  %6021 = vmatprep.mubr.msk.f32.mxu0 %vm1027_vm2, %v1116_v23  ;;  %v7671_v23 = vld [vmem:[#allocation2 + $0x92] sm:$0xff] }
 0x13a   : > { %v7424_v38 = vld [vmem:[#allocation2 + $0x180] sm:$0xff]  ;;  %v7426_v39 = vld [vmem:[#allocation2 + $0x188] sm:$0xff] }
 0x13b   : > { %6166 = vmatprep.mubr.msk.f32.mxu1 %vm1027_vm2, %v7424_v38 }
 0x13c   : > { %6022 = vmatmul.mubr.msk.f32.vlgmr.msra.gmra.mrb[32].mxu0 %vm1027_vm2, %v1117_v37  ;;  %v7677_v37 = vld [vmem:[#allocation2 + $0x9a] sm:$0xff] }
 0x13d   : > { %6167 = vmatmul.mubr.msk.f32.gmra.mrb[14].mxu1 %vm1027_vm2, %v7426_v39  ;;  %6024 = vmatprep.mubr.msk.f32.mxu0 %vm1027_vm2, %v7433_v40 }
 0x13e   : > { %6171 = vmatprep.mubr.msk.f32.mxu1 %vm1027_vm2, %v7139_v56  ;;  %6070 = vmatpush3.msk.msra.mxu0 %vm1279_vm4, %v7124_v42  ;;  %v7454_v56 = vld [vmem:[#allocation2 + $0x30] sm:$0xff]  ;;  %v7464_v42 = vld [vmem:[#allocation2 + $0x38] sm:$0xff] }
 0x13f   : > { %6119 = vmatprep.subr.msk.mxu0 %vm1279_vm4, %v7070_v9 }
 0x140   : > { %6025 = vmatmul.mubr.msk.f32.gmra.mrb[34].mxu0 %vm1027_vm2, %v7441_v41 }
 0x141   : > { %6172 = vmatmul.mubr.msk.f32.vlgmr.msra.gmra.mrb[16].mxu1 %vm1027_vm2, %v7146_v59  ;;  %6027 = vmatprep.mubr.msk.f32.mxu0 %vm1027_vm2, %v7454_v56  ;;  %v7470_v59 = vld [vmem:[#allocation2 + $0x48] sm:$0xff] }
 0x142   : > { %6220 = vmatpush3.msk.msra.mxu1 %vm1279_vm4, %v7285_v52  ;;  %6174 = vmatprep.mubr.msk.f32.mxu1 %vm1027_vm2, %v7155_v6  ;;  %v7476_v6 = vld [vmem:[#allocation2 + $0x50] sm:$0xff]  ;;  %v7482_v52 = vld [vmem:[#allocation2 + $0x60] sm:$0xff] }
 0x143   : > { %6269 = vmatprep.subr.msk.mxu1 %vm1279_vm4, %v7446_v43 }
 0x144   : > { %6028 = vmatmul.mubr.msk.f32.gmra.mrb[36].mxu0 %vm1027_vm2, %v7464_v42 }
 0x145   : > { %6175 = vmatmul.mubr.msk.f32.gmra.mrb[18].mxu1 %vm1027_vm2, %v7162_v7  ;;  %6030 = vmatprep.mubr.msk.f32.mxu0 %vm1027_vm2, %v7470_v59  ;;  %v7488_v7 = vld [vmem:[#allocation2 + $0x68] sm:$0xff] }
 0x146   : > { %6177 = vmatprep.mubr.msk.f32.mxu1 %vm1027_vm2, %v7171_v21  ;;  %v7494_v21 = vld [vmem:[#allocation2 + $0x78] sm:$0xff] }
 0x148   : > { %6031 = vmatmul.mubr.msk.f32.gmra.mrb[38].mxu0 %vm1027_vm2, %v7476_v6 }
 0x149   : > { %6178 = vmatmul.mubr.msk.f32.gmra.mrb[20].mxu1 %vm1027_vm2, %v7178_v24  ;;  %6033 = vmatprep.mubr.msk.f32.mxu0 %vm1027_vm2, %v7482_v52  ;;  %v7500_v24 = vld [vmem:[#allocation2 + $0x80] sm:$0xff] }
 0x14a   : > { %6180 = vmatprep.mubr.msk.f32.mxu1 %vm1027_vm2, %v7187_v33  ;;  %v7506_v33 = vld [vmem:[#allocation2 + $0x90] sm:$0xff] }
 0x14c   : > { %6034 = vmatmul.mubr.msk.f32.gmra.mrb[40].mxu0 %vm1027_vm2, %v7488_v7 }
 0x14d   : > { %6181 = vmatmul.mubr.msk.f32.gmra.mrb[22].mxu1 %vm1027_vm2, %v7194_v36  ;;  %6036 = vmatprep.mubr.msk.f32.mxu0 %vm1027_vm2, %v7494_v21  ;;  %v7512_v36 = vld [vmem:[#allocation2 + $0x98] sm:$0xff] }
 0x14e   : > { %6183 = vmatprep.mubr.msk.f32.mxu1 %vm1027_vm2, %v7203_v46  ;;  %v7518_v46 = vld [vmem:[#allocation2 + $0xa8] sm:$0xff] }
 0x150   : > { %6037 = vmatmul.mubr.msk.f32.gmra.mrb[42].mxu0 %vm1027_vm2, %v7500_v24 }
 0x151   : > { %6184 = vmatmul.mubr.msk.f32.gmra.mrb[24].mxu1 %vm1027_vm2, %v7210_v49  ;;  %6039 = vmatprep.mubr.msk.f32.mxu0 %vm1027_vm2, %v7506_v33  ;;  %v7524_v49 = vld [vmem:[#allocation2 + $0xb0] sm:$0xff] }
 0x152   : > { %6186 = vmatprep.mubr.msk.f32.mxu1 %vm1027_vm2, %v7219_v60  ;;  %v7530_v60 = vld [vmem:[#allocation2 + $0xc0] sm:$0xff] }
 0x154   : > { %6040 = vmatmul.mubr.msk.f32.gmra.mrb[44].mxu0 %vm1027_vm2, %v7512_v36 }
 0x155   : > { %6187 = vmatmul.mubr.msk.f32.gmra.mrb[26].mxu1 %vm1027_vm2, %v7226_v63  ;;  %6042 = vmatprep.mubr.msk.f32.mxu0 %vm1027_vm2, %v7518_v46  ;;  %v7536_v63 = vld [vmem:[#allocation2 + $0xc8] sm:$0xff] }
 0x156   : > { %6189 = vmatprep.mubr.msk.f32.mxu1 %vm1027_vm2, %v7235_v13  ;;  %v1832_v13 = vld [vmem:[#allocation2 + $0x2] sm:$0xff] }
 0x158   : > { %6043 = vmatmul.mubr.msk.f32.gmra.mrb[46].mxu0 %vm1027_vm2, %v7524_v49 }
 0x159   : > { %6190 = vmatmul.mubr.msk.f32.gmra.mrb[28].mxu1 %vm1027_vm2, %v7242_v18  ;;  %6045 = vmatprep.mubr.msk.f32.mxu0 %vm1027_vm2, %v7530_v60  ;;  %v7598_v18 = vld [vmem:[#allocation2 + $0x181] sm:$0xff] }
 0x15a   : > { %6192 = vmatprep.mubr.msk.f32.mxu1 %vm1027_vm2, %v7251_v29  ;;  %v1833_v29 = vld [vmem:[#allocation2 + $0xa] sm:$0xff] }
 0x15c   : > { %6046 = vmatmul.mubr.msk.f32.gmra.mrb[48].mxu0 %vm1027_vm2, %v7536_v63 }
 0x15d   : > { %6193 = vmatmul.mubr.msk.f32.gmra.mrb[30].mxu1 %vm1027_vm2, %v7258_v32  ;;  %6048 = vmatprep.mubr.msk.f32.mxu0 %vm1027_vm2, %v7269_v45  ;;  %v7603_v32 = vld [vmem:[#allocation2 + $0x189] sm:$0xff] }
 0x15e   : > { %6195 = vmatprep.mubr.msk.f32.mxu1 %vm1027_vm2, %v7267_v44 }
 0x160   : > { %6049 = vmatmul.mubr.msk.f32.gmra.mrb[50].mxu0 %vm1027_vm2, %v7271_v47 }
 0x161   : > { %6196 = vmatmul.mubr.msk.f32.gmra.mrb[0].mxu1 %vm1027_vm2, %v7280_v51  ;;  %6051 = vmatprep.mubr.msk.f32.mxu0 %vm1027_vm2, %v7300_v4 }
 0x162   : > { %6198 = vmatprep.mubr.msk.f32.mxu1 %vm1027_vm2, %v7298_v3 }
 0x164   : > { %6052 = vmatmul.mubr.msk.f32.gmra.mrb[52].mxu0 %vm1027_vm2, %v7302_v5 }
 0x165   : > { %6199 = vmatmul.mubr.msk.f32.gmra.mrb[2].mxu1 %vm1027_vm2, %v7313_v2  ;;  %6054 = vmatprep.mubr.msk.f32.mxu0 %vm1027_vm2, %v7326_v26 }
 0x166   : > { %6201 = vmatprep.mubr.msk.f32.mxu1 %vm1027_vm2, %v7324_v25 }
 0x168   : > { %6055 = vmatmul.mubr.msk.f32.gmra.mrb[54].mxu0 %vm1027_vm2, %v7328_v27 }
 0x169   : > { %6202 = vmatmul.mubr.msk.f32.gmra.mrb[4].mxu1 %vm1027_vm2, %v7337_v31  ;;  %6057 = vmatprep.mubr.msk.f32.mxu0 %vm1027_vm2, %v7350_v50 }
 0x16a   : > { %6204 = vmatprep.mubr.msk.f32.mxu1 %vm1027_vm2, %v7348_v48 }
 0x16c   : > { %6058 = vmatmul.mubr.msk.f32.gmra.mrb[56].mxu0 %vm1027_vm2, %v7352_v53 }
 0x16d   : > { %6205 = vmatmul.mubr.msk.f32.gmra.mrb[6].mxu1 %vm1027_vm2, %v7361_v57  ;;  %6060 = vmatprep.mubr.msk.f32.mxu0 %vm1027_vm2, %v7373_v1 }
 0x16e   : > { %6207 = vmatprep.mubr.msk.f32.mxu1 %vm1027_vm2, %v7371_v10 }
 0x170   : > { %6061 = vmatmul.mubr.msk.f32.gmra.mrb[58].mxu0 %vm1027_vm2, %v7375_v8 }
 0x171   : > { %6208 = vmatmul.mubr.msk.f32.gmra.mrb[8].mxu1 %vm1027_vm2, %v7383_v14  ;;  %6063 = vmatprep.mubr.msk.f32.mxu0 %vm1027_vm2, %v7392_v17 }
 0x172   : > { %6210 = vmatprep.mubr.msk.f32.mxu1 %vm1027_vm2, %v7390_v19 }
 0x174   : > { %6064 = vmatmul.mubr.msk.f32.gmra.mrb[60].mxu0 %vm1027_vm2, %v7394_v20 }
 0x175   : > { %6211 = vmatmul.mubr.msk.f32.gmra.mrb[10].mxu1 %vm1027_vm2, %v7401_v22  ;;  %6066 = vmatprep.mubr.msk.f32.mxu0 %vm1027_vm2, %v7409_v30 }
 0x176   : > { %6213 = vmatprep.mubr.msk.f32.mxu1 %vm1027_vm2, %v7407_v28 }
 0x178   : > { %6067 = vmatmul.mubr.msk.f32.gmra.mrb[62].mxu0 %vm1027_vm2, %v7411_v34 }
 0x179   : > { %6214 = vmatmul.mubr.msk.f32.gmra.mrb[12].mxu1 %vm1027_vm2, %v7417_v35  ;;  %6071 = vmatprep.mubr.msk.f32.mxu0 %vm1027_vm2, %v1832_v13  ;;  %v7689_v13 = vld [vmem:[#allocation2 + $0xb2] sm:$0xff] }
 0x17a   : > { %6216 = vmatprep.mubr.msk.f32.mxu1 %vm1027_vm2, %v7598_v18  ;;  %8396 = vst [vmem:[#allocation3_spill] sm:$0xff] %v7689_v13 }
 0x17c   : > { %6072 = vmatmul.mubr.msk.f32.vlgmr.msra.gmra.mrb[32].mxu0 %vm1027_vm2, %v1833_v29  ;;  %v7695_v29 = vld [vmem:[#allocation2 + $0xc2] sm:$0xff] }
 0x17d   : > { %6217 = vmatmul.mubr.msk.f32.gmra.mrb[14].mxu1 %vm1027_vm2, %v7603_v32  ;;  %6074 = vmatprep.mubr.msk.f32.mxu0 %vm1027_vm2, %v1834_v54  ;;  %8397 = vst [vmem:[#allocation4_spill] sm:$0xff] %v7695_v29 }
 0x17e   : > { %6221 = vmatprep.mubr.msk.f32.mxu1 %vm1027_vm2, %v1834_v54  ;;  %6120 = vmatpush3.msk.msra.mxu0 %vm1279_vm4, %v7070_v9  ;;  %v7629_v9 = vld [vmem:[#allocation2 + $0x3a] sm:$0xff]  ;;  %v7701_v54 = vld [vmem:[#allocation2 + $0xca] sm:$0xff] }
 0x17f   : > { %8398 = vst [vmem:[#allocation5_spill] sm:$0xff] %v7701_v54 }
 0x180   : > { %6075 = vmatmul.mubr.msk.f32.gmra.mrb[34].mxu0 %vm1027_vm2, %v1835_v55 }
 0x181   : > { %6222 = vmatmul.mubr.msk.f32.vlgmr.msra.gmra.mrb[16].mxu1 %vm1027_vm2, %v1835_v55  ;;  %6077 = vmatprep.mubr.msk.f32.mxu0 %vm1027_vm2, %v7619_v61  ;;  %v7707_v55 = vld [vmem:[#allocation2 + $0xda] sm:$0xff] }
 0x182   : > { %6270 = vmatpush3.msk.msra.mxu1 %vm1279_vm4, %v7446_v43  ;;  %6224 = vmatprep.mubr.msk.f32.mxu1 %vm1027_vm2, %v7619_v61  ;;  %v7683_v43 = vld [vmem:[#allocation2 + $0xaa] sm:$0xff]  ;;  %8399 = vst [vmem:[#allocation6_spill] sm:$0xff] %v7707_v55 }
 0x183   : > { %6319 = vmatprep.subr.msk.mxu1 %vm1279_vm4, %v7615_v58 }
 0x184   : > { %6078 = vmatmul.mubr.msk.f32.gmra.mrb[36].mxu0 %vm1027_vm2, %v7629_v9 }
 0x185   : > { %6225 = vmatmul.mubr.msk.f32.gmra.mrb[18].mxu1 %vm1027_vm2, %v7629_v9  ;;  %6080 = vmatprep.mubr.msk.f32.mxu0 %vm1027_vm2, %v7635_v62 }
 0x186   : > { %6227 = vmatprep.mubr.msk.f32.mxu1 %vm1027_vm2, %v7635_v62 }
 0x188   : > { %6081 = vmatmul.mubr.msk.f32.gmra.mrb[38].mxu0 %vm1027_vm2, %v7641_v12 }
 0x189   : > { %6228 = vmatmul.mubr.msk.f32.gmra.mrb[20].mxu1 %vm1027_vm2, %v7641_v12  ;;  %6083 = vmatprep.mubr.msk.f32.mxu0 %vm1027_vm2, %v7647_v0 }
 0x18a   : > { %6230 = vmatprep.mubr.msk.f32.mxu1 %vm1027_vm2, %v7647_v0 }
 0x18c   : > { %6084 = vmatmul.mubr.msk.f32.gmra.mrb[40].mxu0 %vm1027_vm2, %v7653_v11 }
 0x18d   : > { %6231 = vmatmul.mubr.msk.f32.gmra.mrb[22].mxu1 %vm1027_vm2, %v7653_v11  ;;  %6086 = vmatprep.mubr.msk.f32.mxu0 %vm1027_vm2, %v7659_v15 }
 0x18e   : > { %6233 = vmatprep.mubr.msk.f32.mxu1 %vm1027_vm2, %v7659_v15 }
 0x190   : > { %6087 = vmatmul.mubr.msk.f32.gmra.mrb[42].mxu0 %vm1027_vm2, %v7665_v16 }
 0x191   : > { %6234 = vmatmul.mubr.msk.f32.gmra.mrb[24].mxu1 %vm1027_vm2, %v7665_v16  ;;  %6089 = vmatprep.mubr.msk.f32.mxu0 %vm1027_vm2, %v7671_v23 }
 0x192   : > { %6236 = vmatprep.mubr.msk.f32.mxu1 %vm1027_vm2, %v7671_v23 }
 0x194   : > { %6090 = vmatmul.mubr.msk.f32.gmra.mrb[44].mxu0 %vm1027_vm2, %v7677_v37 }
 0x195   : > { %6237 = vmatmul.mubr.msk.f32.gmra.mrb[26].mxu1 %vm1027_vm2, %v7677_v37  ;;  %6092 = vmatprep.mubr.msk.f32.mxu0 %vm1027_vm2, %v7683_v43 }
 0x196   : > { %6239 = vmatprep.mubr.msk.f32.mxu1 %vm1027_vm2, %v7683_v43 }
 0x198   : > { %6093 = vmatmul.mubr.msk.f32.gmra.mrb[46].mxu0 %vm1027_vm2, %v7689_v13 }
 0x199   : > { %6240 = vmatmul.mubr.msk.f32.gmra.mrb[28].mxu1 %vm1027_vm2, %v7689_v13  ;;  %6095 = vmatprep.mubr.msk.f32.mxu0 %vm1027_vm2, %v7695_v29  ;;  %v7713_v13 = vld [vmem:[#allocation2 + $0xe2] sm:$0xff] }
 0x19a   : > { %6242 = vmatprep.mubr.msk.f32.mxu1 %vm1027_vm2, %v7695_v29  ;;  %8400 = vst [vmem:[#allocation7_spill] sm:$0xff] %v7713_v13  ;;  %v7719_v29 = vld [vmem:[#allocation2 + $0xf2] sm:$0xff] }
 0x19b   : > { %8401 = vst [vmem:[#allocation8_spill] sm:$0xff] %v7719_v29 }
 0x19c   : > { %6096 = vmatmul.mubr.msk.f32.gmra.mrb[48].mxu0 %vm1027_vm2, %v7701_v54 }
 0x19d   : > { %6243 = vmatmul.mubr.msk.f32.gmra.mrb[30].mxu1 %vm1027_vm2, %v7701_v54  ;;  %6098 = vmatprep.mubr.msk.f32.mxu0 %vm1027_vm2, %v7707_v55  ;;  %v7725_v54 = vld [vmem:[#allocation2 + $0xfa] sm:$0xff] }
 0x19e   : > { %6245 = vmatprep.mubr.msk.f32.mxu1 %vm1027_vm2, %v7707_v55  ;;  %8402 = vst [vmem:[#allocation9_spill] sm:$0xff] %v7725_v54  ;;  %v7731_v55 = vld [vmem:[#allocation2 + $0x10a] sm:$0xff] }
 0x19f   : > { %8403 = vst [vmem:[#allocation10_spill] sm:$0xff] %v7731_v55 }
 0x1a0   : > { %6099 = vmatmul.mubr.msk.f32.gmra.mrb[50].mxu0 %vm1027_vm2, %v7713_v13 }
 0x1a1   : > { %6246 = vmatmul.mubr.msk.f32.gmra.mrb[0].mxu1 %vm1027_vm2, %v7713_v13  ;;  %6101 = vmatprep.mubr.msk.f32.mxu0 %vm1027_vm2, %v7719_v29  ;;  %v7737_v13 = vld [vmem:[#allocation2 + $0x112] sm:$0xff] }
 0x1a2   : > { %6248 = vmatprep.mubr.msk.f32.mxu1 %vm1027_vm2, %v7719_v29  ;;  %8404 = vst [vmem:[#allocation11_spill] sm:$0xff] %v7737_v13  ;;  %v7743_v29 = vld [vmem:[#allocation2 + $0x122] sm:$0xff] }
 0x1a3   : > { %8405 = vst [vmem:[#allocation12_spill] sm:$0xff] %v7743_v29 }
 0x1a4   : > { %6102 = vmatmul.mubr.msk.f32.gmra.mrb[52].mxu0 %vm1027_vm2, %v7725_v54 }
 0x1a5   : > { %6249 = vmatmul.mubr.msk.f32.gmra.mrb[2].mxu1 %vm1027_vm2, %v7725_v54  ;;  %6104 = vmatprep.mubr.msk.f32.mxu0 %vm1027_vm2, %v7731_v55  ;;  %v7749_v54 = vld [vmem:[#allocation2 + $0x12a] sm:$0xff] }
 0x1a6   : > { %6251 = vmatprep.mubr.msk.f32.mxu1 %vm1027_vm2, %v7731_v55  ;;  %8406 = vst [vmem:[#allocation13_spill] sm:$0xff] %v7749_v54  ;;  %v7755_v55 = vld [vmem:[#allocation2 + $0x13a] sm:$0xff] }
 0x1a7   : > { %8407 = vst [vmem:[#allocation14_spill] sm:$0xff] %v7755_v55 }
 0x1a8   : > { %6105 = vmatmul.mubr.msk.f32.gmra.mrb[54].mxu0 %vm1027_vm2, %v7737_v13 }
 0x1a9   : > { %6252 = vmatmul.mubr.msk.f32.gmra.mrb[4].mxu1 %vm1027_vm2, %v7737_v13  ;;  %6107 = vmatprep.mubr.msk.f32.mxu0 %vm1027_vm2, %v7743_v29  ;;  %v7761_v13 = vld [vmem:[#allocation2 + $0x142] sm:$0xff] }
 0x1aa   : > { %6254 = vmatprep.mubr.msk.f32.mxu1 %vm1027_vm2, %v7743_v29  ;;  %8408 = vst [vmem:[#allocation15_spill] sm:$0xff] %v7761_v13  ;;  %v7767_v29 = vld [vmem:[#allocation2 + $0x152] sm:$0xff] }
 0x1ab   : > { %8409 = vst [vmem:[#allocation16_spill] sm:$0xff] %v7767_v29 }
 0x1ac   : > { %6108 = vmatmul.mubr.msk.f32.gmra.mrb[56].mxu0 %vm1027_vm2, %v7749_v54 }
 0x1ad   : > { %6255 = vmatmul.mubr.msk.f32.gmra.mrb[6].mxu1 %vm1027_vm2, %v7749_v54  ;;  %6110 = vmatprep.mubr.msk.f32.mxu0 %vm1027_vm2, %v7755_v55  ;;  %v7773_v54 = vld [vmem:[#allocation2 + $0x15a] sm:$0xff] }
 0x1ae   : > { %6257 = vmatprep.mubr.msk.f32.mxu1 %vm1027_vm2, %v7755_v55  ;;  %8410 = vst [vmem:[#allocation17_spill] sm:$0xff] %v7773_v54  ;;  %v7779_v55 = vld [vmem:[#allocation2 + $0x16a] sm:$0xff] }
 0x1b0   : > { %6111 = vmatmul.mubr.msk.f32.gmra.mrb[58].mxu0 %vm1027_vm2, %v7761_v13 }
 0x1b1   : > { %6258 = vmatmul.mubr.msk.f32.gmra.mrb[8].mxu1 %vm1027_vm2, %v7761_v13  ;;  %6113 = vmatprep.mubr.msk.f32.mxu0 %vm1027_vm2, %v7767_v29  ;;  %v7785_v13 = vld [vmem:[#allocation2 + $0x172] sm:$0xff] }
 0x1b2   : > { %6260 = vmatprep.mubr.msk.f32.mxu1 %vm1027_vm2, %v7767_v29  ;;  %v7791_v29 = vld [vmem:[#allocation2 + $0x182] sm:$0xff] }
 0x1b4   : > { %6114 = vmatmul.mubr.msk.f32.gmra.mrb[60].mxu0 %vm1027_vm2, %v7773_v54 }
 0x1b5   : > { %6261 = vmatmul.mubr.msk.f32.gmra.mrb[10].mxu1 %vm1027_vm2, %v7773_v54  ;;  %6116 = vmatprep.mubr.msk.f32.mxu0 %vm1027_vm2, %v7779_v55  ;;  %v7797_v54 = vld [vmem:[#allocation2 + $0x18a] sm:$0xff] }
 0x1b6   : > { %6263 = vmatprep.mubr.msk.f32.mxu1 %vm1027_vm2, %v7779_v55 }
 0x1b8   : > { %6117 = vmatmul.mubr.msk.f32.gmra.mrb[62].mxu0 %vm1027_vm2, %v7785_v13 }
 0x1b9   : > { %6264 = vmatmul.mubr.msk.f32.gmra.mrb[12].mxu1 %vm1027_vm2, %v7785_v13  ;;  %6121 = vmatprep.mubr.msk.f32.mxu0 %vm1027_vm2, %v7433_v40  ;;  %v5481_v40 = vld [vmem:[%s8374_s7 + $0x10] sm:$0x3] }
 0x1ba   : > { %6266 = vmatprep.mubr.msk.f32.mxu1 %vm1027_vm2, %v7791_v29 }
 0x1bc   : > { %6122 = vmatmul.mubr.msk.f32.vlgmr.msra.gmra.mrb[32].mxu0 %vm1027_vm2, %v7441_v41  ;;  %v8422_v41 = vld [vmem:[#allocation14_spill] sm:$0xff] }
 0x1bd   : > { %6267 = vmatmul.mubr.msk.f32.gmra.mrb[14].mxu1 %vm1027_vm2, %v7797_v54  ;;  %6124 = vmatprep.mubr.msk.f32.mxu0 %vm1027_vm2, %v7454_v56 }
 0x1be   : > { %6271 = vmatprep.mubr.msk.f32.mxu1 %vm1027_vm2, %v7454_v56  ;;  %v8423_v56 = vld [vmem:[#allocation15_spill] sm:$0xff] }
 0x1c0   : > { %6125 = vmatmul.mubr.msk.f32.gmra.mrb[34].mxu0 %vm1027_vm2, %v7464_v42 }
 0x1c1   : > { %6272 = vmatmul.mubr.msk.f32.vlgmr.msra.gmra.mrb[16].mxu1 %vm1027_vm2, %v7464_v42  ;;  %6127 = vmatprep.mubr.msk.f32.mxu0 %vm1027_vm2, %v7470_v59  ;;  %v8424_v42 = vld [vmem:[#allocation16_spill] sm:$0xff] }
 0x1c2   : > { %6320 = vmatpush3.msk.msra.mxu1 %vm1279_vm4, %v7615_v58  ;;  %6274 = vmatprep.mubr.msk.f32.mxu1 %vm1027_vm2, %v7470_v59 }
 0x1c3   : > { %6369 = vmatprep.subr.msk.mxu1 %vm1279_vm4, %v5481_v40 }
 0x1c4   : > { %6128 = vmatmul.mubr.msk.f32.gmra.mrb[36].mxu0 %vm1027_vm2, %v7476_v6 }
 0x1c5   : > { %6275 = vmatmul.mubr.msk.f32.gmra.mrb[18].mxu1 %vm1027_vm2, %v7476_v6  ;;  %6130 = vmatprep.mubr.msk.f32.mxu0 %vm1027_vm2, %v7482_v52 }
 0x1c6   : > { %6277 = vmatprep.mubr.msk.f32.mxu1 %vm1027_vm2, %v7482_v52  ;;  %v8425_v52 = vld [vmem:[#allocation17_spill] sm:$0xff] }
 0x1c8   : > { %6131 = vmatmul.mubr.msk.f32.gmra.mrb[38].mxu0 %vm1027_vm2, %v7488_v7 }
 0x1c9   : > { %6278 = vmatmul.mubr.msk.f32.gmra.mrb[20].mxu1 %vm1027_vm2, %v7488_v7  ;;  %6133 = vmatprep.mubr.msk.f32.mxu0 %vm1027_vm2, %v7494_v21 }
 0x1ca   : > { %6280 = vmatprep.mubr.msk.f32.mxu1 %vm1027_vm2, %v7494_v21 }
 0x1cc   : > { %6134 = vmatmul.mubr.msk.f32.gmra.mrb[40].mxu0 %vm1027_vm2, %v7500_v24 }
 0x1cd   : > { %6281 = vmatmul.mubr.msk.f32.gmra.mrb[22].mxu1 %vm1027_vm2, %v7500_v24  ;;  %6136 = vmatprep.mubr.msk.f32.mxu0 %vm1027_vm2, %v7506_v33  ;;  %v4203_v24 = vld [vmem:[#allocation2 + $0x19a] sm:$0xff] }
 0x1ce   : > { %6283 = vmatprep.mubr.msk.f32.mxu1 %vm1027_vm2, %v7506_v33 }
 0x1d0   : > { %6137 = vmatmul.mubr.msk.f32.gmra.mrb[42].mxu0 %vm1027_vm2, %v7512_v36 }
 0x1d1   : > { %6284 = vmatmul.mubr.msk.f32.gmra.mrb[24].mxu1 %vm1027_vm2, %v7512_v36  ;;  %6139 = vmatprep.mubr.msk.f32.mxu0 %vm1027_vm2, %v7518_v46 }
 0x1d2   : > { %6286 = vmatprep.mubr.msk.f32.mxu1 %vm1027_vm2, %v7518_v46  ;;  %v4204_v46 = vld [vmem:[#allocation2 + $0x1a2] sm:$0xff] }
 0x1d4   : > { %6140 = vmatmul.mubr.msk.f32.gmra.mrb[44].mxu0 %vm1027_vm2, %v7524_v49 }
 0x1d5   : > { %6287 = vmatmul.mubr.msk.f32.gmra.mrb[26].mxu1 %vm1027_vm2, %v7524_v49  ;;  %6142 = vmatprep.mubr.msk.f32.mxu0 %vm1027_vm2, %v7530_v60 }
 0x1d6   : > { %6289 = vmatprep.mubr.msk.f32.mxu1 %vm1027_vm2, %v7530_v60 }
 0x1d8   : > { %6143 = vmatmul.mubr.msk.f32.gmra.mrb[46].mxu0 %vm1027_vm2, %v7536_v63 }
 0x1d9   : > { %6290 = vmatmul.mubr.msk.f32.gmra.mrb[28].mxu1 %vm1027_vm2, %v7536_v63 }
 0x1da   : > { %6292 = vmatprep.mubr.msk.f32.mxu1 %vm1027_vm2, %v7269_v45  ;;  %v3423_v45 = vld [vmem:[#allocation2 + $0x198] sm:$0xff] }
 0x1dd   : > { %6293 = vmatmul.mubr.msk.f32.gmra.mrb[30].mxu1 %vm1027_vm2, %v7271_v47  ;;  %v3424_v47 = vld [vmem:[#allocation2 + $0x1a0] sm:$0xff] }
 0x1de   : > { %6295 = vmatprep.mubr.msk.f32.mxu1 %vm1027_vm2, %v7300_v4  ;;  %v3783_v4 = vld [vmem:[#allocation2 + $0x31] sm:$0xff] }
 0x1e1   : > { %6296 = vmatmul.mubr.msk.f32.gmra.mrb[0].mxu1 %vm1027_vm2, %v7302_v5  ;;  %v3784_v5 = vld [vmem:[#allocation2 + $0x39] sm:$0xff] }
 0x1e2   : > { %6298 = vmatprep.mubr.msk.f32.mxu1 %vm1027_vm2, %v7326_v26  ;;  %v3785_v26 = vld [vmem:[#allocation2 + $0x49] sm:$0xff] }
 0x1e5   : > { %6299 = vmatmul.mubr.msk.f32.gmra.mrb[2].mxu1 %vm1027_vm2, %v7328_v27  ;;  %v3786_v27 = vld [vmem:[#allocation2 + $0x51] sm:$0xff] }
 0x1e6   : > { %6301 = vmatprep.mubr.msk.f32.mxu1 %vm1027_vm2, %v7350_v50  ;;  %v3787_v50 = vld [vmem:[#allocation2 + $0x61] sm:$0xff] }
 0x1e9   : > { %6302 = vmatmul.mubr.msk.f32.gmra.mrb[4].mxu1 %vm1027_vm2, %v7352_v53  ;;  %v3788_v53 = vld [vmem:[#allocation2 + $0x69] sm:$0xff] }
 0x1ea   : > { %6304 = vmatprep.mubr.msk.f32.mxu1 %vm1027_vm2, %v7373_v1  ;;  %v3789_v1 = vld [vmem:[#allocation2 + $0x79] sm:$0xff] }
 0x1ed   : > { %6305 = vmatmul.mubr.msk.f32.gmra.mrb[6].mxu1 %vm1027_vm2, %v7375_v8  ;;  %v3790_v8 = vld [vmem:[#allocation2 + $0x81] sm:$0xff] }
 0x1ee   : > { %6307 = vmatprep.mubr.msk.f32.mxu1 %vm1027_vm2, %v7392_v17  ;;  %v3791_v17 = vld [vmem:[#allocation2 + $0x91] sm:$0xff] }
 0x1f1   : > { %6308 = vmatmul.mubr.msk.f32.gmra.mrb[8].mxu1 %vm1027_vm2, %v7394_v20  ;;  %v3792_v20 = vld [vmem:[#allocation2 + $0x99] sm:$0xff] }
 0x1f2   : > { %6310 = vmatprep.mubr.msk.f32.mxu1 %vm1027_vm2, %v7409_v30  ;;  %v3793_v30 = vld [vmem:[#allocation2 + $0xa9] sm:$0xff] }
 0x1f5   : > { %6311 = vmatmul.mubr.msk.f32.gmra.mrb[10].mxu1 %vm1027_vm2, %v7411_v34  ;;  %v3794_v34 = vld [vmem:[#allocation2 + $0xb1] sm:$0xff] }
 0x1f6   : > { %6313 = vmatprep.mubr.msk.f32.mxu1 %vm1027_vm2, %v7424_v38  ;;  %v3795_v38 = vld [vmem:[#allocation2 + $0xc1] sm:$0xff] }
 0x1f9   : > { %6314 = vmatmul.mubr.msk.f32.gmra.mrb[12].mxu1 %vm1027_vm2, %v7426_v39  ;;  %v3796_v39 = vld [vmem:[#allocation2 + $0xc9] sm:$0xff] }
 0x1fa   : > { %6316 = vmatprep.mubr.msk.f32.mxu1 %vm1027_vm2, %v3423_v45 }
 0x1fd   : > { %6317 = vmatmul.mubr.msk.f32.gmra.mrb[14].mxu1 %vm1027_vm2, %v3424_v47 }
 0x1fe   : > { %6321 = vmatprep.mubr.msk.f32.mxu1 %vm1027_vm2, %v3783_v4 }
 0x201   : > { %6322 = vmatmul.mubr.msk.f32.vlgmr.msra.gmra.mrb[16].mxu1 %vm1027_vm2, %v3784_v5 }
 0x202   : > { %6370 = vmatpush3.msk.msra.mxu1 %vm1279_vm4, %v5481_v40  ;;  %6324 = vmatprep.mubr.msk.f32.mxu1 %vm1027_vm2, %v3785_v26 }
 0x205   : > { %6325 = vmatmul.mubr.msk.f32.gmra.mrb[18].mxu1 %vm1027_vm2, %v3786_v27  ;;  %v8062_v27 = vld [vmem:[%s8375_s8] ss:$0 sm:$0xff] }
 0x206   : > { %6327 = vmatprep.mubr.msk.f32.mxu1 %vm1027_vm2, %v3787_v50 }
 0x209   : > { %6328 = vmatmul.mubr.msk.f32.gmra.mrb[20].mxu1 %vm1027_vm2, %v3788_v53 }
 0x20a   : > { %6330 = vmatprep.mubr.msk.f32.mxu1 %vm1027_vm2, %v3789_v1  ;;  %v8067_v1 = vld [vmem:[%s8376_s9] ss:$0 sm:$0xff] }
 0x20d   : > { %6331 = vmatmul.mubr.msk.f32.gmra.mrb[22].mxu1 %vm1027_vm2, %v3790_v8 }
 0x20e   : > { %6333 = vmatprep.mubr.msk.f32.mxu1 %vm1027_vm2, %v3791_v17 }
 0x211   : > { %6334 = vmatmul.mubr.msk.f32.gmra.mrb[24].mxu1 %vm1027_vm2, %v3792_v20  ;;  %v8073_v20 = vld [vmem:[%s8377_s10] ss:$0 sm:$0xff] }
 0x212   : > { %6336 = vmatprep.mubr.msk.f32.mxu1 %vm1027_vm2, %v3793_v30 }
 0x215   : > { %6337 = vmatmul.mubr.msk.f32.gmra.mrb[26].mxu1 %vm1027_vm2, %v3794_v34 }
 0x216   : > { %6339 = vmatprep.mubr.msk.f32.mxu1 %vm1027_vm2, %v3795_v38 }
 0x219   : > { %6340 = vmatmul.mubr.msk.f32.gmra.mrb[28].mxu1 %vm1027_vm2, %v3796_v39 }
 0x21a   : > { %6342 = vmatprep.mubr.msk.f32.mxu1 %vm1027_vm2, %v7267_v44  ;;  %v4712_v44 = vld [vmem:[%s8378_s11] sm:$0x3] }
 0x21b   : > { %6419 = vmatprep.subr.msk.mxu0 %vm1279_vm4, %v4712_v44 }
 0x21c   : > { %6420 = vmatpush3.msk.msra.mxu0 %vm1279_vm4, %v4712_v44 }
 0x21d   : > { %6343 = vmatmul.mubr.msk.f32.gmra.mrb[30].mxu1 %vm1027_vm2, %v7280_v51  ;;  %v3813_v51 = vld [vmem:[#allocation2 + $0x199] sm:$0xff] }
 0x21e   : > { %6345 = vmatprep.mubr.msk.f32.mxu1 %vm1027_vm2, %v7298_v3  ;;  %v3814_v3 = vld [vmem:[#allocation2 + $0x1a1] sm:$0xff] }
 0x221   : > { %6346 = vmatmul.mubr.msk.f32.gmra.mrb[0].mxu1 %vm1027_vm2, %v7313_v2  ;;  %v8411_v2 = vld [vmem:[#allocation3_spill] sm:$0xff] }
 0x222   : > { %6348 = vmatprep.mubr.msk.f32.mxu1 %vm1027_vm2, %v7324_v25  ;;  %v8412_v25 = vld [vmem:[#allocation4_spill] sm:$0xff] }
 0x225   : > { %6349 = vmatmul.mubr.msk.f32.gmra.mrb[2].mxu1 %vm1027_vm2, %v7337_v31  ;;  %v8413_v31 = vld [vmem:[#allocation5_spill] sm:$0xff] }
 0x226   : > { %6351 = vmatprep.mubr.msk.f32.mxu1 %vm1027_vm2, %v7348_v48  ;;  %v8414_v48 = vld [vmem:[#allocation6_spill] sm:$0xff] }
 0x229   : > { %6352 = vmatmul.mubr.msk.f32.gmra.mrb[4].mxu1 %vm1027_vm2, %v7361_v57  ;;  %v8415_v57 = vld [vmem:[#allocation7_spill] sm:$0xff] }
 0x22a   : > { %6354 = vmatprep.mubr.msk.f32.mxu1 %vm1027_vm2, %v7371_v10  ;;  %v8416_v10 = vld [vmem:[#allocation8_spill] sm:$0xff] }
 0x22d   : > { %6355 = vmatmul.mubr.msk.f32.gmra.mrb[6].mxu1 %vm1027_vm2, %v7383_v14  ;;  %v8417_v14 = vld [vmem:[#allocation9_spill] sm:$0xff] }
 0x22e   : > { %6357 = vmatprep.mubr.msk.f32.mxu1 %vm1027_vm2, %v7390_v19  ;;  %v8418_v19 = vld [vmem:[#allocation10_spill] sm:$0xff] }
 0x231   : > { %6358 = vmatmul.mubr.msk.f32.gmra.mrb[8].mxu1 %vm1027_vm2, %v7401_v22  ;;  %v8419_v22 = vld [vmem:[#allocation11_spill] sm:$0xff] }
 0x232   : > { %6360 = vmatprep.mubr.msk.f32.mxu1 %vm1027_vm2, %v7407_v28  ;;  %v8420_v28 = vld [vmem:[#allocation12_spill] sm:$0xff] }
 0x235   : > { %6361 = vmatmul.mubr.msk.f32.gmra.mrb[10].mxu1 %vm1027_vm2, %v7417_v35  ;;  %v8421_v35 = vld [vmem:[#allocation13_spill] sm:$0xff] }
 0x236   : > { %6363 = vmatprep.mubr.msk.f32.mxu1 %vm1027_vm2, %v7598_v18 }
 0x239   : > { %6364 = vmatmul.mubr.msk.f32.gmra.mrb[12].mxu1 %vm1027_vm2, %v7603_v32 }
 0x23a   : > { %6366 = vmatprep.mubr.msk.f32.mxu1 %vm1027_vm2, %v3813_v51 }
 0x23d   : > { %6367 = vmatmul.mubr.msk.f32.gmra.mrb[14].mxu1 %vm1027_vm2, %v3814_v3 }
 0x23e   : > { %6371 = vmatprep.mubr.msk.f32.mxu1 %vm1027_vm2, %v7619_v61 }
 0x241   : > { %6372 = vmatmul.mubr.msk.f32.vlgmr.msra.gmra.mrb[16].mxu1 %vm1027_vm2, %v7629_v9 }
 0x242   : > { %6374 = vmatprep.mubr.msk.f32.mxu1 %vm1027_vm2, %v7635_v62 }
 0x245   : > { %6375 = vmatmul.mubr.msk.f32.gmra.mrb[18].mxu1 %vm1027_vm2, %v7641_v12 }
 0x246   : > { %6377 = vmatprep.mubr.msk.f32.mxu1 %vm1027_vm2, %v7647_v0 }
 0x249   : > { %6378 = vmatmul.mubr.msk.f32.gmra.mrb[20].mxu1 %vm1027_vm2, %v7653_v11 }
 0x24a   : > { %6380 = vmatprep.mubr.msk.f32.mxu1 %vm1027_vm2, %v7659_v15 }
 0x24d   : > { %6381 = vmatmul.mubr.msk.f32.gmra.mrb[22].mxu1 %vm1027_vm2, %v7665_v16 }
 0x24e   : > { %6383 = vmatprep.mubr.msk.f32.mxu1 %vm1027_vm2, %v7671_v23 }
 0x251   : > { %6384 = vmatmul.mubr.msk.f32.gmra.mrb[24].mxu1 %vm1027_vm2, %v7677_v37 }
 0x252   : > { %6386 = vmatprep.mubr.msk.f32.mxu1 %vm1027_vm2, %v7683_v43 }
 0x255   : > { %6387 = vmatmul.mubr.msk.f32.gmra.mrb[26].mxu1 %vm1027_vm2, %v8411_v2 }
 0x256   : > { %6389 = vmatprep.mubr.msk.f32.mxu1 %vm1027_vm2, %v8412_v25 }
 0x259   : > { %6390 = vmatmul.mubr.msk.f32.gmra.mrb[28].mxu1 %vm1027_vm2, %v8413_v31 }
 0x25a   : > { %6392 = vmatprep.mubr.msk.f32.mxu1 %vm1027_vm2, %v8414_v48 }
 0x25d   : > { %6393 = vmatmul.mubr.msk.f32.gmra.mrb[30].mxu1 %vm1027_vm2, %v8415_v57 }
 0x25e   : > { %6395 = vmatprep.mubr.msk.f32.mxu1 %vm1027_vm2, %v8416_v10 }
 0x261   : > { %6396 = vmatmul.mubr.msk.f32.gmra.mrb[0].mxu1 %vm1027_vm2, %v8417_v14 }
 0x262   : > { %6398 = vmatprep.mubr.msk.f32.mxu1 %vm1027_vm2, %v8418_v19 }
 0x265   : > { %6399 = vmatmul.mubr.msk.f32.gmra.mrb[2].mxu1 %vm1027_vm2, %v8419_v22 }
 0x266   : > { %6401 = vmatprep.mubr.msk.f32.mxu1 %vm1027_vm2, %v8420_v28 }
 0x269   : > { %6402 = vmatmul.mubr.msk.f32.gmra.mrb[4].mxu1 %vm1027_vm2, %v8421_v35 }
 0x26a   : > { %6404 = vmatprep.mubr.msk.f32.mxu1 %vm1027_vm2, %v8422_v41 }
 0x26d   : > { %6405 = vmatmul.mubr.msk.f32.gmra.mrb[6].mxu1 %vm1027_vm2, %v8423_v56 }
 0x26e   : > { %6407 = vmatprep.mubr.msk.f32.mxu1 %vm1027_vm2, %v8424_v42 }
 0x26f   : > { %v8003_v59 = vpop.f32.mrb[48].mxu0 }
 0x270   : > { %v8005_v6 = vpop.f32.mrb[49].mxu0 }
 0x271   : > { %6408 = vmatmul.mubr.msk.f32.gmra.mrb[8].mxu1 %vm1027_vm2, %v8425_v52 }
 0x272   : > { %6410 = vmatprep.mubr.msk.f32.mxu1 %vm1027_vm2, %v7779_v55 }
 0x273   : > { %v8011_v7 = vpop.f32.mrb[50].mxu0 }
 0x274   : > { %v8013_v21 = vpop.f32.mrb[51].mxu0 }
 0x275   : > { %6411 = vmatmul.mubr.msk.f32.gmra.mrb[10].mxu1 %vm1027_vm2, %v7785_v13 }
 0x276   : > { %6413 = vmatprep.mubr.msk.f32.mxu1 %vm1027_vm2, %v7791_v29 }
 0x277   : > { %v8019_v33 = vpop.f32.mrb[52].mxu0 }
 0x278   : > { %v8021_v36 = vpop.f32.mrb[53].mxu0 }
 0x279   : > { %6414 = vmatmul.mubr.msk.f32.gmra.mrb[12].mxu1 %vm1027_vm2, %v7797_v54 }
 0x27a   : > { %6416 = vmatprep.mubr.msk.f32.mxu1 %vm1027_vm2, %v4203_v24 }
 0x27b   : > { %v8026_v49 = vpop.f32.mrb[54].mxu0 }
 0x27c   : > { %v8028_v60 = vpop.f32.mrb[55].mxu0 }
 0x27d   : > { %6417 = vmatmul.mubr.msk.f32.gmra.mrb[14].mxu1 %vm1027_vm2, %v4204_v46 }
 0x27f   : > { %v8031_v63 = vpop.f32.mrb[56].mxu0 }
 0x280   : > { %v8033_v18 = vpop.f32.mrb[57].mxu0 }
 0x283   : > { %v8035_v32 = vpop.f32.mrb[58].mxu0 }
 0x284   : > { %v8037_v58 = vpop.f32.mrb[59].mxu0 }
 0x287   : > { %v8039_v61 = vpop.f32.mrb[60].mxu0 }
 0x288   : > { %v8041_v9 = vpop.f32.mrb[61].mxu0 }
 0x28b   : > { %v8043_v62 = vpop.f32.mrb[62].mxu0 }
 0x28c   : > { %v8045_v12 = vpop.f32.mrb[63].mxu0 }
 0x28f   : > { %v6123_v0 = vpop.f32.mrb[32].mxu0 }
 0x290   : > { %v2421_v11 = vpop.f32.mrb[33].mxu0 }
 0x293   : > { %v6126_v15 = vpop.f32.mrb[34].mxu0 }
 0x294   : > { %v2431_v16 = vpop.f32.mrb[35].mxu0 }
 0x297   : > { %v6129_v23 = vpop.f32.mrb[36].mxu0 }
 0x298   : > { %v2441_v37 = vpop.f32.mrb[37].mxu0 }
 0x29b   : > { %v6132_v43 = vpop.f32.mrb[38].mxu0 }
 0x29c   : > { %v2451_v13 = vpop.f32.mrb[39].mxu0 }
 0x29f   : > { %v6135_v29 = vpop.f32.mrb[40].mxu0 }
 0x2a0   : > { %v2461_v54 = vpop.f32.mrb[41].mxu0 }
 0x2a3   : > { %v8047_v55 = vpop.f32.mrb[42].mxu0 }
 0x2a4   : > { %v8049_v40 = vpop.f32.mrb[43].mxu0 }
 0x2a7   : > { %v8051_v45 = vpop.f32.mrb[44].mxu0 }
 0x2a8   : > { %v8053_v47 = vpop.f32.mrb[45].mxu0 }
 0x2ab   : > { %v8055_v4 = vpop.f32.mrb[46].mxu0 }
 0x2ac   : > { %v8057_v5 = vpop.f32.mrb[47].mxu0 }
 0x314   : > { %v6373_v26 = vpop.f32.mrb[16].mxu1 }
 0x315   : > { %v6471_v50 = vadd.f32 %v6373_v26, %v6123_v0  ;;  %v4372_v53 = vpop.f32.mrb[17].mxu1 }
 0x316   : > { %v6472_v8 = vadd.f32 %v4372_v53, %v2421_v11 }
 0x317   : > { %v4571_v17 = vadd.f32 %v6471_v50, %v8062_v27 }
 0x318   : > { %v4570_v30 = vadd.f32 %v6472_v8, %v8062_v27  ;;  %v6376_v34 = vpop.f32.mrb[18].mxu1 }
 0x319   : > { %v4610_v38 = vmul.f32 %v8067_v1, %v4571_v17  ;;  %v6473_v39 = vadd.f32 %v6376_v34, %v6126_v15  ;;  %v4382_v44 = vpop.f32.mrb[19].mxu1 }
 0x31a   : > { %v4609_v51 = vmul.f32 %v8067_v1, %v4570_v30  ;;  %v6474_v3 = vadd.f32 %v4382_v44, %v2431_v16 }
 0x31b   : > { %v4649_v2 = vadd.f32 %v8073_v20, %v4610_v38  ;;  %v4573_v25 = vadd.f32 %v6473_v39, %v8062_v27 }
 0x31c   : > { %v4648_v31 = vadd.f32 %v8073_v20, %v4609_v51  ;;  %v4572_v48 = vadd.f32 %v6474_v3, %v8062_v27  ;;  %v6379_v57 = vpop.f32.mrb[20].mxu1 }
 0x31d   : > { %v4612_v10 = vmul.f32 %v8067_v1, %v4573_v25  ;;  %v6475_v14 = vadd.f32 %v6379_v57, %v6129_v23  ;;  %v4392_v19 = vpop.f32.mrb[21].mxu1  ;;  %v4681_v41 = vmax.f32 %v4649_v2, 0.0 }
 0x31e   : > { %v4680_v22 = vmax.f32 %v4648_v31, 0.0  ;;  %v4611_v28 = vmul.f32 %v8067_v1, %v4572_v48  ;;  %v6476_v35 = vadd.f32 %v4392_v19, %v2441_v37 }
 0x31f   : > { %v4651_v56 = vadd.f32 %v8073_v20, %v4612_v10  ;;  %v4575_v42 = vadd.f32 %v6475_v14, %v8062_v27 }
 0x320   : > { %v4650_v52 = vadd.f32 %v8073_v20, %v4611_v28  ;;  %v4574_v24 = vadd.f32 %v6476_v35, %v8062_v27  ;;  %v6382_v46 = vpop.f32.mrb[22].mxu1  ;;  %6421 = vmatprep.mubr.msk.f32.mxu0 %vm1027_vm2, %v4680_v22 }
 0x321   : > { %v4614_v0 = vmul.f32 %v8067_v1, %v4575_v42  ;;  %v6477_v11 = vadd.f32 %v6382_v46, %v6132_v43  ;;  %v4402_v15 = vpop.f32.mrb[23].mxu1  ;;  %6422 = vmatmul.mubr.msk.f32.vlgmr.msra.gmra.mrb[64].mxu0 %vm1027_vm2, %v4681_v41  ;;  %v4683_v26 = vmax.f32 %v4651_v56, 0.0 }
 0x322   : > { %v4682_v16 = vmax.f32 %v4650_v52, 0.0  ;;  %v4613_v23 = vmul.f32 %v8067_v1, %v4574_v24  ;;  %v6478_v37 = vadd.f32 %v4402_v15, %v2451_v13 }
 0x323   : > { %v4653_v50 = vadd.f32 %v8073_v20, %v4614_v0  ;;  %v4577_v53 = vadd.f32 %v6477_v11, %v8062_v27 }
 0x324   : > { %v4652_v8 = vadd.f32 %v8073_v20, %v4613_v23  ;;  %v4576_v17 = vadd.f32 %v6478_v37, %v8062_v27  ;;  %v6385_v30 = vpop.f32.mrb[24].mxu1  ;;  %6424 = vmatprep.mubr.msk.f32.mxu0 %vm1027_vm2, %v4682_v16 }
 0x325   : > { %v4616_v43 = vmul.f32 %v8067_v1, %v4577_v53  ;;  %v6479_v34 = vadd.f32 %v6385_v30, %v6135_v29  ;;  %v4412_v38 = vpop.f32.mrb[25].mxu1  ;;  %6425 = vmatmul.mubr.msk.f32.gmra.mrb[66].mxu0 %vm1027_vm2, %v4683_v26  ;;  %v4685_v51 = vmax.f32 %v4653_v50, 0.0 }
 0x326   : > { %v4684_v39 = vmax.f32 %v4652_v8, 0.0  ;;  %v4615_v13 = vmul.f32 %v8067_v1, %v4576_v17  ;;  %v6480_v44 = vadd.f32 %v4412_v38, %v2461_v54 }
 0x327   : > { %v4655_v3 = vadd.f32 %v8073_v20, %v4616_v43  ;;  %v4579_v2 = vadd.f32 %v6479_v34, %v8062_v27 }
 0x328   : > { %v4654_v25 = vadd.f32 %v8073_v20, %v4615_v13  ;;  %v4578_v31 = vadd.f32 %v6480_v44, %v8062_v27  ;;  %v6388_v48 = vpop.f32.mrb[26].mxu1  ;;  %6427 = vmatprep.mubr.msk.f32.mxu0 %vm1027_vm2, %v4684_v39 }
 0x329   : > { %v4618_v29 = vmul.f32 %v8067_v1, %v4579_v2  ;;  %v6481_v57 = vadd.f32 %v6388_v48, %v8047_v55  ;;  %v4422_v10 = vpop.f32.mrb[27].mxu1  ;;  %6428 = vmatmul.mubr.msk.f32.gmra.mrb[68].mxu0 %vm1027_vm2, %v4685_v51  ;;  %v4687_v22 = vmax.f32 %v4655_v3, 0.0 }
 0x32a   : > { %v4686_v54 = vmax.f32 %v4654_v25, 0.0  ;;  %v4617_v14 = vmul.f32 %v8067_v1, %v4578_v31  ;;  %v6482_v19 = vadd.f32 %v4422_v10, %v8049_v40 }
 0x32b   : > { %v4657_v28 = vadd.f32 %v8073_v20, %v4618_v29  ;;  %v4581_v35 = vadd.f32 %v6481_v57, %v8062_v27 }
 0x32c   : > { %v4656_v41 = vadd.f32 %v8073_v20, %v4617_v14  ;;  %v4580_v56 = vadd.f32 %v6482_v19, %v8062_v27  ;;  %v6391_v42 = vpop.f32.mrb[28].mxu1  ;;  %6430 = vmatprep.mubr.msk.f32.mxu0 %vm1027_vm2, %v4686_v54 }
 0x32d   : > { %v4620_v55 = vmul.f32 %v8067_v1, %v4581_v35  ;;  %v6483_v52 = vadd.f32 %v6391_v42, %v8051_v45  ;;  %v4432_v24 = vpop.f32.mrb[29].mxu1  ;;  %6431 = vmatmul.mubr.msk.f32.gmra.mrb[70].mxu0 %vm1027_vm2, %v4687_v22  ;;  %v4689_v11 = vmax.f32 %v4657_v28, 0.0 }
 0x32e   : > { %v4688_v40 = vmax.f32 %v4656_v41, 0.0  ;;  %v4619_v46 = vmul.f32 %v8067_v1, %v4580_v56  ;;  %v6484_v0 = vadd.f32 %v4432_v24, %v8053_v47 }
 0x32f   : > { %v4659_v15 = vadd.f32 %v8073_v20, %v4620_v55  ;;  %v4583_v16 = vadd.f32 %v6483_v52, %v8062_v27 }
 0x330   : > { %v4658_v23 = vadd.f32 %v8073_v20, %v4619_v46  ;;  %v4582_v37 = vadd.f32 %v6484_v0, %v8062_v27  ;;  %v6394_v26 = vpop.f32.mrb[30].mxu1  ;;  %6433 = vmatprep.mubr.msk.f32.mxu0 %vm1027_vm2, %v4688_v40 }
 0x331   : > { %v4622_v45 = vmul.f32 %v8067_v1, %v4583_v16  ;;  %v6485_v50 = vadd.f32 %v6394_v26, %v8055_v4  ;;  %v4442_v53 = vpop.f32.mrb[31].mxu1  ;;  %6434 = vmatmul.mubr.msk.f32.gmra.mrb[72].mxu0 %vm1027_vm2, %v4689_v11  ;;  %v4691_v30 = vmax.f32 %v4659_v15, 0.0 }
 0x332   : > { %v4690_v47 = vmax.f32 %v4658_v23, 0.0  ;;  %v4621_v8 = vmul.f32 %v8067_v1, %v4582_v37  ;;  %v6486_v17 = vadd.f32 %v4442_v53, %v8057_v5 }
 0x333   : > { %v4661_v43 = vadd.f32 %v8073_v20, %v4622_v45  ;;  %v4585_v34 = vadd.f32 %v6485_v50, %v8062_v27 }
 0x334   : > { %v4660_v38 = vadd.f32 %v8073_v20, %v4621_v8  ;;  %v4584_v39 = vadd.f32 %v6486_v17, %v8062_v27  ;;  %v6397_v13 = vpop.f32.mrb[0].mxu1  ;;  %6436 = vmatprep.mubr.msk.f32.mxu0 %vm1027_vm2, %v4690_v47 }
 0x335   : > { %v4624_v4 = vmul.f32 %v8067_v1, %v4585_v34  ;;  %v6487_v44 = vadd.f32 %v6397_v13, %v8003_v59  ;;  %v4452_v51 = vpop.f32.mrb[1].mxu1  ;;  %6437 = vmatmul.mubr.msk.f32.gmra.mrb[74].mxu0 %vm1027_vm2, %v4691_v30  ;;  %v4693_v25 = vmax.f32 %v4661_v43, 0.0 }
 0x336   : > { %v4692_v5 = vmax.f32 %v4660_v38, 0.0  ;;  %v4623_v3 = vmul.f32 %v8067_v1, %v4584_v39  ;;  %v6488_v2 = vadd.f32 %v4452_v51, %v8005_v6 }
 0x337   : > { %v4663_v31 = vadd.f32 %v8073_v20, %v4624_v4  ;;  %v4587_v48 = vadd.f32 %v6487_v44, %v8062_v27 }
 0x338   : > { %v4662_v29 = vadd.f32 %v8073_v20, %v4623_v3  ;;  %v4586_v57 = vadd.f32 %v6488_v2, %v8062_v27  ;;  %v6400_v10 = vpop.f32.mrb[2].mxu1  ;;  %6439 = vmatprep.mubr.msk.f32.mxu0 %vm1027_vm2, %v4692_v5 }
 0x339   : > { %v4626_v59 = vmul.f32 %v8067_v1, %v4587_v48  ;;  %v6489_v54 = vadd.f32 %v6400_v10, %v8011_v7  ;;  %v4462_v14 = vpop.f32.mrb[3].mxu1  ;;  %6440 = vmatmul.mubr.msk.f32.gmra.mrb[76].mxu0 %vm1027_vm2, %v4693_v25  ;;  %v4695_v28 = vmax.f32 %v4663_v31, 0.0 }
 0x33a   : > { %v4694_v6 = vmax.f32 %v4662_v29, 0.0  ;;  %v4625_v19 = vmul.f32 %v8067_v1, %v4586_v57  ;;  %v6490_v22 = vadd.f32 %v4462_v14, %v8013_v21 }
 0x33b   : > { %v4665_v35 = vadd.f32 %v8073_v20, %v4626_v59  ;;  %v4589_v41 = vadd.f32 %v6489_v54, %v8062_v27 }
 0x33c   : > { %v4664_v56 = vadd.f32 %v8073_v20, %v4625_v19  ;;  %v4588_v42 = vadd.f32 %v6490_v22, %v8062_v27  ;;  %v6403_v55 = vpop.f32.mrb[4].mxu1  ;;  %6442 = vmatprep.mubr.msk.f32.mxu0 %vm1027_vm2, %v4694_v6 }
 0x33d   : > { %v4628_v7 = vmul.f32 %v8067_v1, %v4589_v41  ;;  %v6491_v52 = vadd.f32 %v6403_v55, %v8019_v33  ;;  %v4472_v24 = vpop.f32.mrb[5].mxu1  ;;  %6443 = vmatmul.mubr.msk.f32.gmra.mrb[78].mxu0 %vm1027_vm2, %v4695_v28  ;;  %v4697_v0 = vmax.f32 %v4665_v35, 0.0 }
 0x33e   : > { %v4696_v21 = vmax.f32 %v4664_v56, 0.0  ;;  %v4627_v40 = vmul.f32 %v8067_v1, %v4588_v42  ;;  %v6492_v46 = vadd.f32 %v4472_v24, %v8021_v36 }
 0x33f   : > { %v4667_v11 = vadd.f32 %v8073_v20, %v4628_v7  ;;  %v4591_v15 = vadd.f32 %v6491_v52, %v8062_v27 }
 0x340   : > { %v4666_v16 = vadd.f32 %v8073_v20, %v4627_v40  ;;  %v4590_v23 = vadd.f32 %v6492_v46, %v8062_v27  ;;  %v6406_v37 = vpop.f32.mrb[6].mxu1  ;;  %6445 = vmatprep.mubr.msk.f32.mxu0 %vm1027_vm2, %v4696_v21 }
 0x341   : > { %v4630_v33 = vmul.f32 %v8067_v1, %v4591_v15  ;;  %v6493_v26 = vadd.f32 %v6406_v37, %v8026_v49  ;;  %v4482_v45 = vpop.f32.mrb[7].mxu1  ;;  %6446 = vmatmul.mubr.msk.f32.gmra.mrb[80].mxu0 %vm1027_vm2, %v4697_v0  ;;  %v4699_v47 = vmax.f32 %v4667_v11, 0.0 }
 0x342   : > { %v4698_v36 = vmax.f32 %v4666_v16, 0.0  ;;  %v4629_v50 = vmul.f32 %v8067_v1, %v4590_v23  ;;  %v6494_v53 = vadd.f32 %v4482_v45, %v8028_v60 }
 0x343   : > { %v4669_v8 = vadd.f32 %v8073_v20, %v4630_v33  ;;  %v4593_v17 = vadd.f32 %v6493_v26, %v8062_v27 }
 0x344   : > { %v4668_v30 = vadd.f32 %v8073_v20, %v4629_v50  ;;  %v4592_v43 = vadd.f32 %v6494_v53, %v8062_v27  ;;  %v6409_v34 = vpop.f32.mrb[8].mxu1  ;;  %6448 = vmatprep.mubr.msk.f32.mxu0 %vm1027_vm2, %v4698_v36 }
 0x345   : > { %v4632_v49 = vmul.f32 %v8067_v1, %v4593_v17  ;;  %v6495_v38 = vadd.f32 %v6409_v34, %v8031_v63  ;;  %v4492_v39 = vpop.f32.mrb[9].mxu1  ;;  %6449 = vmatmul.mubr.msk.f32.gmra.mrb[82].mxu0 %vm1027_vm2, %v4699_v47  ;;  %v4701_v44 = vmax.f32 %v4669_v8, 0.0  ;;  %v6736_v17 = vld [vmem:[%s6871_s17 + $0x8] sm:$0xff] }
 0x346   : > { %v4700_v60 = vmax.f32 %v4668_v30, 0.0  ;;  %v4631_v13 = vmul.f32 %v8067_v1, %v4592_v43  ;;  %v6496_v4 = vadd.f32 %v4492_v39, %v8033_v18  ;;  %v6737_v43 = vld [vmem:[%s6871_s17] sm:$0xff] }
 0x347   : > { %v4671_v51 = vadd.f32 %v8073_v20, %v4632_v49  ;;  %v4595_v5 = vadd.f32 %v6495_v38, %v8062_v27 }
 0x348   : > { %v4670_v3 = vadd.f32 %v8073_v20, %v4631_v13  ;;  %v4594_v2 = vadd.f32 %v6496_v4, %v8062_v27  ;;  %v6412_v25 = vpop.f32.mrb[10].mxu1  ;;  %6451 = vmatprep.mubr.msk.f32.mxu0 %vm1027_vm2, %v4700_v60  ;;  %v6738_v13 = vld [vmem:[%s6871_s17 + $0x18] sm:$0xff] }
 0x349   : > { %v4634_v63 = vmul.f32 %v8067_v1, %v4595_v5  ;;  %v6497_v31 = vadd.f32 %v6412_v25, %v8035_v32  ;;  %v4502_v48 = vpop.f32.mrb[11].mxu1  ;;  %6452 = vmatmul.mubr.msk.f32.gmra.mrb[84].mxu0 %vm1027_vm2, %v4701_v44  ;;  %v4703_v10 = vmax.f32 %v4671_v51, 0.0  ;;  %v6739_v44 = vld [vmem:[%s6871_s17 + $0x10] sm:$0xff] }
 0x34a   : > { %v4702_v18 = vmax.f32 %v4670_v3, 0.0  ;;  %v4633_v29 = vmul.f32 %v8067_v1, %v4594_v2  ;;  %v6498_v57 = vadd.f32 %v4502_v48, %v8037_v58  ;;  %v6741_v48 = vld [vmem:[%s6871_s17 + $0x20] sm:$0xff] }
 0x34b   : > { %v4673_v59 = vadd.f32 %v8073_v20, %v4634_v63  ;;  %v4597_v54 = vadd.f32 %v6497_v31, %v8062_v27  ;;  %v6740_v63 = vld [vmem:[%s6871_s17 + $0x28] sm:$0xff] }
 0x34c   : > { %v4672_v14 = vadd.f32 %v8073_v20, %v4633_v29  ;;  %v4596_v6 = vadd.f32 %v6498_v57, %v8062_v27  ;;  %v6415_v19 = vpop.f32.mrb[12].mxu1  ;;  %6454 = vmatprep.mubr.msk.f32.mxu0 %vm1027_vm2, %v4702_v18 }
 0x34d   : > { %v4636_v32 = vmul.f32 %v8067_v1, %v4597_v54  ;;  %v6499_v22 = vadd.f32 %v6415_v19, %v8039_v61  ;;  %v4512_v28 = vpop.f32.mrb[13].mxu1  ;;  %6455 = vmatmul.mubr.msk.f32.gmra.mrb[86].mxu0 %vm1027_vm2, %v4703_v10  ;;  %v4705_v56 = vmax.f32 %v4673_v59, 0.0  ;;  %v6742_v54 = vld [vmem:[%s6871_s17 + $0x38] sm:$0xff] }
 0x34e   : > { %v4704_v58 = vmax.f32 %v4672_v14, 0.0  ;;  %v4635_v35 = vmul.f32 %v8067_v1, %v4596_v6  ;;  %v6500_v41 = vadd.f32 %v4512_v28, %v8041_v9  ;;  %v6743_v6 = vld [vmem:[%s6871_s17 + $0x30] sm:$0xff] }
 0x34f   : > { %v4675_v42 = vadd.f32 %v8073_v20, %v4636_v32  ;;  %v4599_v55 = vadd.f32 %v6499_v22, %v8062_v27 }
 0x350   : > { %v4674_v7 = vadd.f32 %v8073_v20, %v4635_v35  ;;  %v4598_v52 = vadd.f32 %v6500_v41, %v8062_v27  ;;  %v6418_v24 = vpop.f32.mrb[14].mxu1  ;;  %6457 = vmatprep.mubr.msk.f32.mxu0 %vm1027_vm2, %v4704_v58  ;;  %v6744_v35 = vld [vmem:[%s6871_s17 + $0x48] sm:$0xff] }
 0x351   : > { %v4638_v61 = vmul.f32 %v8067_v1, %v4599_v55  ;;  %v6501_v21 = vadd.f32 %v6418_v24, %v8043_v62  ;;  %v4522_v40 = vpop.f32.mrb[15].mxu1  ;;  %6458 = vmatmul.mubr.msk.f32.gmra.mrb[88].mxu0 %vm1027_vm2, %v4705_v56  ;;  %v4707_v11 = vmax.f32 %v4675_v42, 0.0  ;;  %v6745_v56 = vld [vmem:[%s6871_s17 + $0x40] sm:$0xff] }
 0x352   : > { %v4706_v9 = vmax.f32 %v4674_v7, 0.0  ;;  %v4637_v46 = vmul.f32 %v8067_v1, %v4598_v52  ;;  %v6502_v0 = vadd.f32 %v4522_v40, %v8045_v12  ;;  %v6747_v40 = vld [vmem:[%s6871_s17 + $0x50] sm:$0xff] }
 0x353   : > { %v4677_v15 = vadd.f32 %v8073_v20, %v4638_v61  ;;  %v4601_v16 = vadd.f32 %v6501_v21, %v8062_v27  ;;  %v6746_v61 = vld [vmem:[%s6871_s17 + $0x58] sm:$0xff] }
 0x354   : > { %v4676_v23 = vadd.f32 %v8073_v20, %v4637_v46  ;;  %v4600_v37 = vadd.f32 %v6502_v0, %v8062_v27  ;;  %6460 = vmatprep.mubr.msk.f32.mxu0 %vm1027_vm2, %v4706_v9 }
 0x355   : > { %v4640_v62 = vmul.f32 %v8067_v1, %v4601_v16  ;;  %6461 = vmatmul.mubr.msk.f32.gmra.mrb[90].mxu0 %vm1027_vm2, %v4707_v11  ;;  %v4709_v12 = vmax.f32 %v4677_v15, 0.0  ;;  %v6748_v16 = vld [vmem:[%s6871_s17 + $0x68] sm:$0xff] }
 0x356   : > { %v4708_v33 = vmax.f32 %v4676_v23, 0.0  ;;  %v4639_v26 = vmul.f32 %v8067_v1, %v4600_v37  ;;  %v8227_v1 = vld [vmem:[%s8379_s12] ss:$0 sm:$0xff] }
 0x357   : > { %v4679_v45 = vadd.f32 %v8073_v20, %v4640_v62  ;;  %v6749_v37 = vld [vmem:[%s6871_s17 + $0x60] sm:$0xff] }
 0x358   : > { %v4678_v36 = vadd.f32 %v8073_v20, %v4639_v26  ;;  %6463 = vmatprep.mubr.msk.f32.mxu0 %vm1027_vm2, %v4708_v33 }
 0x359   : > { %6464 = vmatmul.mubr.msk.f32.gmra.mrb[92].mxu0 %vm1027_vm2, %v4709_v12  ;;  %v4711_v50 = vmax.f32 %v4679_v45, 0.0 }
 0x35a   : > { %v4710_v27 = vmax.f32 %v4678_v36, 0.0  ;;  %v6750_v36 = vld [vmem:[%s6871_s17 + $0x78] sm:$0xff] }
 0x35c   : > { %6466 = vmatprep.mubr.msk.f32.mxu0 %vm1027_vm2, %v4710_v27 }
 0x35d   : > { %6467 = vmatmul.mubr.msk.f32.gmra.mrb[94].mxu0 %vm1027_vm2, %v4711_v50  ;;  %v6751_v50 = vld [vmem:[%s6871_s17 + $0x70] sm:$0xff] }
 0x3f4   : > { %v6423_v53 = vpop.f32.mrb[64].mxu0 }
 0x3f5   : > { %v4891_v47 = vadd.f32 %v6423_v53, %v8227_v1  ;;  %v4885_v20 = vpop.f32.mrb[65].mxu0 }
 0x3f6   : > { %v4886_v8 = vadd.f32 %v8227_v1, %v4885_v20 }
 0x3f7   : > { %v5045_v30 = vadd.f32 %v6736_v17, %v4891_v47 }
 0x3f8   : > { %v5044_v34 = vadd.f32 %v6737_v43, %v4886_v8  ;;  %v6426_v49 = vpop.f32.mrb[66].mxu0 }
 0x3f9   : > { %5077 = vst.msk [vmem:[%s8235_s16 + $0x8] sm:$0xff] %vm591_vm1, %v5045_v30  ;;  %v4901_v38 = vadd.f32 %v6426_v49, %v8227_v1  ;;  %v4895_v39 = vpop.f32.mrb[67].mxu0  ;;  %v6752_v30 = vld [vmem:[%s6871_s17 + $0x88] sm:$0xff] }
 0x3fa   : > { %5076 = vst.msk [vmem:[%s8235_s16] sm:$0xff] %vm591_vm1, %v5044_v34  ;;  %v4896_v60 = vadd.f32 %v8227_v1, %v4895_v39  ;;  %v6753_v34 = vld [vmem:[%s6871_s17 + $0x80] sm:$0xff] }
 0x3fb   : > { %v5047_v4 = vadd.f32 %v6738_v13, %v4901_v38 }
 0x3fc   : > { %v5046_v51 = vadd.f32 %v6739_v44, %v4896_v60  ;;  %v6429_v5 = vpop.f32.mrb[68].mxu0 }
 0x3fd   : > { %5079 = vst.msk [vmem:[%s8235_s16 + $0x18] sm:$0xff] %vm591_vm1, %v5047_v4  ;;  %v4911_v3 = vadd.f32 %v6429_v5, %v8227_v1  ;;  %v4905_v2 = vpop.f32.mrb[69].mxu0  ;;  %v6754_v4 = vld [vmem:[%s6871_s17 + $0x98] sm:$0xff] }
 0x3fe   : > { %5078 = vst.msk [vmem:[%s8235_s16 + $0x10] sm:$0xff] %vm591_vm1, %v5046_v51  ;;  %v4906_v25 = vadd.f32 %v8227_v1, %v4905_v2  ;;  %v6755_v51 = vld [vmem:[%s6871_s17 + $0x90] sm:$0xff] }
 0x3ff   : > { %v5049_v31 = vadd.f32 %v6740_v63, %v4911_v3 }
 0x400   : > { %v5048_v18 = vadd.f32 %v6741_v48, %v4906_v25  ;;  %v6432_v29 = vpop.f32.mrb[70].mxu0 }
 0x401   : > { %5081 = vst.msk [vmem:[%s8235_s16 + $0x28] sm:$0xff] %vm591_vm1, %v5049_v31  ;;  %v4921_v57 = vadd.f32 %v6432_v29, %v8227_v1  ;;  %v4915_v10 = vpop.f32.mrb[71].mxu0  ;;  %v6756_v31 = vld [vmem:[%s6871_s17 + $0xa8] sm:$0xff] }
 0x402   : > { %5080 = vst.msk [vmem:[%s8235_s16 + $0x20] sm:$0xff] %vm591_vm1, %v5048_v18  ;;  %v4916_v59 = vadd.f32 %v8227_v1, %v4915_v10  ;;  %v6757_v18 = vld [vmem:[%s6871_s17 + $0xa0] sm:$0xff] }
 0x403   : > { %v5051_v14 = vadd.f32 %v6742_v54, %v4921_v57 }
 0x404   : > { %v5050_v19 = vadd.f32 %v6743_v6, %v4916_v59  ;;  %v6435_v32 = vpop.f32.mrb[72].mxu0 }
 0x405   : > { %5083 = vst.msk [vmem:[%s8235_s16 + $0x38] sm:$0xff] %vm591_vm1, %v5051_v14  ;;  %v4931_v22 = vadd.f32 %v6435_v32, %v8227_v1  ;;  %v4925_v28 = vpop.f32.mrb[73].mxu0  ;;  %v6758_v14 = vld [vmem:[%s6871_s17 + $0xb8] sm:$0xff] }
 0x406   : > { %5082 = vst.msk [vmem:[%s8235_s16 + $0x30] sm:$0xff] %vm591_vm1, %v5050_v19  ;;  %v4926_v58 = vadd.f32 %v8227_v1, %v4925_v28  ;;  %v6759_v19 = vld [vmem:[%s6871_s17 + $0xb0] sm:$0xff] }
 0x407   : > { %v5053_v41 = vadd.f32 %v6744_v35, %v4931_v22 }
 0x408   : > { %v5052_v42 = vadd.f32 %v6745_v56, %v4926_v58  ;;  %v6438_v55 = vpop.f32.mrb[74].mxu0 }
 0x409   : > { %5085 = vst.msk [vmem:[%s8235_s16 + $0x48] sm:$0xff] %vm591_vm1, %v5053_v41  ;;  %v4941_v7 = vadd.f32 %v6438_v55, %v8227_v1  ;;  %v4935_v52 = vpop.f32.mrb[75].mxu0  ;;  %v6760_v41 = vld [vmem:[%s6871_s17 + $0xc8] sm:$0xff] }
 0x40a   : > { %5084 = vst.msk [vmem:[%s8235_s16 + $0x40] sm:$0xff] %vm591_vm1, %v5052_v42  ;;  %v4936_v24 = vadd.f32 %v8227_v1, %v4935_v52  ;;  %v6761_v42 = vld [vmem:[%s6871_s17 + $0xc0] sm:$0xff] }
 0x40b   : > { %v5055_v21 = vadd.f32 %v6746_v61, %v4941_v7 }
 0x40c   : > { %v5054_v9 = vadd.f32 %v6747_v40, %v4936_v24  ;;  %v6441_v46 = vpop.f32.mrb[76].mxu0 }
 0x40d   : > { %5087 = vst.msk [vmem:[%s8235_s16 + $0x58] sm:$0xff] %vm591_vm1, %v5055_v21  ;;  %v4951_v0 = vadd.f32 %v6441_v46, %v8227_v1  ;;  %v4945_v11 = vpop.f32.mrb[77].mxu0  ;;  %v6762_v21 = vld [vmem:[%s6871_s17 + $0xd8] sm:$0xff] }
 0x40e   : > { %5086 = vst.msk [vmem:[%s8235_s16 + $0x50] sm:$0xff] %vm591_vm1, %v5054_v9  ;;  %v4946_v15 = vadd.f32 %v8227_v1, %v4945_v11  ;;  %v6763_v9 = vld [vmem:[%s6871_s17 + $0xd0] sm:$0xff] }
 0x40f   : > { %v5057_v23 = vadd.f32 %v6748_v16, %v4951_v0 }
 0x410   : > { %v5056_v62 = vadd.f32 %v6749_v37, %v4946_v15  ;;  %v6444_v33 = vpop.f32.mrb[78].mxu0 }
 0x411   : > { %5089 = vst.msk [vmem:[%s8235_s16 + $0x68] sm:$0xff] %vm591_vm1, %v5057_v23  ;;  %v4961_v26 = vadd.f32 %v6444_v33, %v8227_v1  ;;  %v4955_v12 = vpop.f32.mrb[79].mxu0  ;;  %v6764_v23 = vld [vmem:[%s6871_s17 + $0xe8] sm:$0xff] }
 0x412   : > { %5088 = vst.msk [vmem:[%s8235_s16 + $0x60] sm:$0xff] %vm591_vm1, %v5056_v62  ;;  %v4956_v45 = vadd.f32 %v8227_v1, %v4955_v12  ;;  %v6765_v62 = vld [vmem:[%s6871_s17 + $0xe0] sm:$0xff] }
 0x413   : > { %v5059_v27 = vadd.f32 %v6750_v36, %v4961_v26 }
 0x414   : > { %v5058_v53 = vadd.f32 %v6751_v50, %v4956_v45  ;;  %v6447_v47 = vpop.f32.mrb[80].mxu0 }
 0x415   : > { %5091 = vst.msk [vmem:[%s8235_s16 + $0x78] sm:$0xff] %vm591_vm1, %v5059_v27  ;;  %v4971_v20 = vadd.f32 %v6447_v47, %v8227_v1  ;;  %v4965_v8 = vpop.f32.mrb[81].mxu0  ;;  %v6766_v27 = vld [vmem:[%s6871_s17 + $0xf8] sm:$0xff] }
 0x416   : > { %5090 = vst.msk [vmem:[%s8235_s16 + $0x70] sm:$0xff] %vm591_vm1, %v5058_v53  ;;  %v4966_v17 = vadd.f32 %v8227_v1, %v4965_v8  ;;  %v6767_v53 = vld [vmem:[%s6871_s17 + $0xf0] sm:$0xff] }
 0x417   : > { %v5061_v43 = vadd.f32 %v6752_v30, %v4971_v20 }
 0x418   : > { %v5060_v49 = vadd.f32 %v6753_v34, %v4966_v17  ;;  %v6450_v38 = vpop.f32.mrb[82].mxu0 }
 0x419   : > { %5093 = vst.msk [vmem:[%s8235_s16 + $0x88] sm:$0xff] %vm591_vm1, %v5061_v43  ;;  %v4981_v39 = vadd.f32 %v6450_v38, %v8227_v1  ;;  %v4975_v60 = vpop.f32.mrb[83].mxu0 }
 0x41a   : > { %5092 = vst.msk [vmem:[%s8235_s16 + $0x80] sm:$0xff] %vm591_vm1, %v5060_v49  ;;  %v4976_v13 = vadd.f32 %v8227_v1, %v4975_v60 }
 0x41b   : > { %v5063_v44 = vadd.f32 %v6754_v4, %v4981_v39 }
 0x41c   : > { %v5062_v5 = vadd.f32 %v6755_v51, %v4976_v13  ;;  %v6453_v3 = vpop.f32.mrb[84].mxu0 }
 0x41d   : > { %5095 = vst.msk [vmem:[%s8235_s16 + $0x98] sm:$0xff] %vm591_vm1, %v5063_v44  ;;  %v4991_v2 = vadd.f32 %v6453_v3, %v8227_v1  ;;  %v4985_v25 = vpop.f32.mrb[85].mxu0 }
 0x41e   : > { %5094 = vst.msk [vmem:[%s8235_s16 + $0x90] sm:$0xff] %vm591_vm1, %v5062_v5  ;;  %v4986_v63 = vadd.f32 %v8227_v1, %v4985_v25 }
 0x41f   : > { %v5065_v48 = vadd.f32 %v6756_v31, %v4991_v2 }
 0x420   : > { %v5064_v29 = vadd.f32 %v6757_v18, %v4986_v63  ;;  %v6456_v57 = vpop.f32.mrb[86].mxu0 }
 0x421   : > { %5097 = vst.msk [vmem:[%s8235_s16 + $0xa8] sm:$0xff] %vm591_vm1, %v5065_v48  ;;  %v5001_v10 = vadd.f32 %v6456_v57, %v8227_v1  ;;  %v4995_v59 = vpop.f32.mrb[87].mxu0 }
 0x422   : > { %5096 = vst.msk [vmem:[%s8235_s16 + $0xa0] sm:$0xff] %vm591_vm1, %v5064_v29  ;;  %v4996_v54 = vadd.f32 %v8227_v1, %v4995_v59 }
 0x423   : > { %v5067_v6 = vadd.f32 %v6758_v14, %v5001_v10 }
 0x424   : > { %v5066_v32 = vadd.f32 %v6759_v19, %v4996_v54  ;;  %v6459_v22 = vpop.f32.mrb[88].mxu0 }
 0x425   : > { %5099 = vst.msk [vmem:[%s8235_s16 + $0xb8] sm:$0xff] %vm591_vm1, %v5067_v6  ;;  %v5011_v28 = vadd.f32 %v6459_v22, %v8227_v1  ;;  %v5005_v58 = vpop.f32.mrb[89].mxu0 }
 0x426   : > { %5098 = vst.msk [vmem:[%s8235_s16 + $0xb0] sm:$0xff] %vm591_vm1, %v5066_v32  ;;  %v5006_v35 = vadd.f32 %v8227_v1, %v5005_v58 }
 0x427   : > { %v5069_v56 = vadd.f32 %v6760_v41, %v5011_v28 }
 0x428   : > { %v5068_v55 = vadd.f32 %v6761_v42, %v5006_v35  ;;  %v6462_v7 = vpop.f32.mrb[90].mxu0 }
 0x429   : > { %5101 = vst.msk [vmem:[%s8235_s16 + $0xc8] sm:$0xff] %vm591_vm1, %v5069_v56  ;;  %v5021_v52 = vadd.f32 %v6462_v7, %v8227_v1  ;;  %v5015_v24 = vpop.f32.mrb[91].mxu0 }
 0x42a   : > { %5100 = vst.msk [vmem:[%s8235_s16 + $0xc0] sm:$0xff] %vm591_vm1, %v5068_v55  ;;  %v5016_v61 = vadd.f32 %v8227_v1, %v5015_v24 }
 0x42b   : > { %v5071_v40 = vadd.f32 %v6762_v21, %v5021_v52 }
 0x42c   : > { %v5070_v46 = vadd.f32 %v6763_v9, %v5016_v61  ;;  %v6465_v0 = vpop.f32.mrb[92].mxu0 }
 0x42d   : > { %5103 = vst.msk [vmem:[%s8235_s16 + $0xd8] sm:$0xff] %vm591_vm1, %v5071_v40  ;;  %v5031_v11 = vadd.f32 %v6465_v0, %v8227_v1  ;;  %v5025_v15 = vpop.f32.mrb[93].mxu0 }
 0x42e   : > { %5102 = vst.msk [vmem:[%s8235_s16 + $0xd0] sm:$0xff] %vm591_vm1, %v5070_v46  ;;  %v5026_v16 = vadd.f32 %v8227_v1, %v5025_v15 }
 0x42f   : > { %v5073_v37 = vadd.f32 %v6764_v23, %v5031_v11 }
 0x430   : > { %v5072_v33 = vadd.f32 %v6765_v62, %v5026_v16  ;;  %v6468_v26 = vpop.f32.mrb[94].mxu0 }
 0x431   : > { %5105 = vst.msk [vmem:[%s8235_s16 + $0xe8] sm:$0xff] %vm591_vm1, %v5073_v37  ;;  %v5041_v12 = vadd.f32 %v6468_v26, %v8227_v1  ;;  %v5035_v45 = vpop.f32.mrb[95].mxu0 }
 0x432   : > { %5104 = vst.msk [vmem:[%s8235_s16 + $0xe0] sm:$0xff] %vm591_vm1, %v5072_v33  ;;  %v5036_v36 = vadd.f32 %v8227_v1, %v5035_v45 }
 0x433   : > { %v5075_v50 = vadd.f32 %v6766_v27, %v5041_v12 }
 0x434   : > { %v5074_v47 = vadd.f32 %v6767_v53, %v5036_v36 }
 0x435   : > { %5107 = vst.msk [vmem:[%s8235_s16 + $0xf8] sm:$0xff] %vm591_vm1, %v5075_v50 }
 0x436   : > { %5106 = vst.msk [vmem:[%s8235_s16 + $0xf0] sm:$0xff] %vm591_vm1, %v5074_v47 }
 0x437 PF: > { %s23_s25 = sadd.s32 1, %s6774_s25  }
 0x438   : > { %p20_p4 = scmp.ge.s32.totalorder %s23_s25, 4  }
 0x43a   :  { %22 = sbr.rel (!%p20_p4) target bundleno = 1 (0x1), region = 112 }

</bundles_post_ra>
